<compile_context>
chip_gen: v7x
topology: tpu7x:2x2x1
jax: 0.10.0
libtpu: 0.0.40
codegen_flags: <defaults>
</compile_context>

<pallas_src>
import jax
import jax.numpy as jnp
from jax.experimental import pallas as pl
from jax.experimental.pallas import tpu as pltpu

BN_EPS = 1e-5


def cnn_kernel(p_ref, wc_ref,
               w1_ref, b1_ref,
               w2_ref, b2_ref,
               w3_ref, b3_ref,
               w4_ref, b4_ref,
               out_ref):
    f32 = jnp.float32
    bf16 = jnp.bfloat16

    # Fused complex conv (conv1 o convx) as ONE real MXU matmul:
    #   [pr | pi] @ [[Wr, Wi], [-Wi, Wr]] = [Re | Im]
    c = jnp.dot(p_ref[...], wc_ref[...], preferred_element_type=f32)   # (T, 32)
    rr, ri = c[:, :16], c[:, 16:]
    # TODO(synk): plain sqrt(r^2 + i^2); not an overflow/underflow-safe hypot.
    h = jnp.sqrt(rr * rr + ri * ri).astype(bf16)                       # torch.abs

    def fc_relu(h, w_ref, b_ref):
        # BN (eval) + bias already folded into w/b in the wrapper;
        # eval-mode dropout is the identity.
        z = jnp.dot(h, w_ref[...], preferred_element_type=f32) + b_ref[...]
        return jnp.maximum(z, 0.0).astype(bf16)

    h = fc_relu(h, w1_ref, b1_ref)   # fc1 + bn1 + relu1
    h = fc_relu(h, w2_ref, b2_ref)   # fc2 + bn2 + relu2
    h = fc_relu(h, w3_ref, b3_ref)   # fc3 + bn3 + relu3

    # fc4 (256 -> 1): per-row reduction, avoids a 1-column MXU matmul.
    z = jnp.sum(h.astype(f32) * w4_ref[...], axis=-1, keepdims=True) + b4_ref[...]
    out_ref[...] = z


def init_params(key):
    ks = jax.random.split(key, 9)

    def cplx(k, shape, fan_in):
        kr, ki = jax.random.split(k)
        s = 1.0 / jnp.sqrt(jnp.float32(fan_in))
        return (jax.random.normal(kr, shape, jnp.float32) * s
                + 1j * jax.random.normal(ki, shape, jnp.float32) * s).astype(jnp.complex64)

    def lin(k, fin, fout):
        kw, kb = jax.random.split(k)
        s = 1.0 / (fin ** 0.5)
        w = jax.random.uniform(kw, (fin, fout), jnp.float32, -s, s)
        b = jax.random.uniform(kb, (1, fout), jnp.float32, -s, s)
        return w, b

    def bn(k, f):
        kg, kb = jax.random.split(k)
        gamma = 1.0 + 0.1 * jax.random.normal(kg, (1, f), jnp.float32)
        beta = 0.1 * jax.random.normal(kb, (1, f), jnp.float32)
        mean = jnp.zeros((1, f), jnp.float32)   # PyTorch running_mean init
        var = jnp.ones((1, f), jnp.float32)     # PyTorch running_var init
        return jnp.concatenate([gamma, beta, mean, var], axis=0)  # (4, F)

    return dict(
        w_conv1=cplx(ks[0], (8, 1, 2, 2), 1 * 2 * 2),
        w_conv2=cplx(ks[1], (16, 8, 2, 2), 8 * 2 * 2),
        fc1=lin(ks[2], 16, 1024),  bn1=bn(ks[3], 1024),
        fc2=lin(ks[4], 1024, 512), bn2=bn(ks[5], 512),
        fc3=lin(ks[6], 512, 256),  bn3=bn(ks[7], 256),
        fc4=lin(ks[8], 256, 1),
    )


def cnn_forward(x, params, tile_n=512):
    """x: (N, 1, 3, 3) complex64 -> (N,) float32 (matches y_hat.squeeze())."""
    N = x.shape[0]

    # ---------------- plain-JAX glue: im2col + algebraic fusion ----------------
    # conv1 patches, order (pos=(i,j), kh, kw) -> (N, 16) complex
    patches = [x[:, 0, i:i + 2, j:j + 2].reshape(N, 4)
               for i in range(2) for j in range(2)]
    p1 = jnp.concatenate(patches, axis=1)                          # (N, 16) c64

    # conv1 weight (8,1,2,2) -> block-diag (16,32); convx weight -> (32,16);
    # fuse both linear conv stages into a single (16,16) complex weight.
    w1_mat = params['w_conv1'].reshape(8, 4).T                     # (4, 8)
    w1_bd = jnp.kron(jnp.eye(4, dtype=w1_mat.dtype), w1_mat)       # (16, 32)
    w2_mat = jnp.transpose(params['w_conv2'], (2, 3, 1, 0)).reshape(32, 16)
    w_fused = w1_bd @ w2_mat                                       # (16, 16) c64
    wr = w_fused.real.astype(jnp.float32)
    wi = w_fused.imag.astype(jnp.float32)
    # Real embedding: one real matmul computes both Re and Im of the complex conv.
    wc = jnp.block([[wr, wi], [-wi, wr]])                          # (32, 32) f32

    # Fold eval-mode BatchNorm (+ FC bias) into FC weights/bias; bf16 weights.
    def fold_fc_bn(fc, bnp):
        w, b = fc
        gamma, beta, mean, var = bnp[0], bnp[1], bnp[2], bnp[3]
        scale = gamma * jax.lax.rsqrt(var + BN_EPS)
        w_f = (w * scale[None, :]).astype(jnp.bfloat16)
        b_f = ((b[0] - mean) * scale + beta)[None, :].astype(jnp.float32)
        return w_f, b_f

    w1f, b1f = fold_fc_bn(params['fc1'], params['bn1'])
    w2f, b2f = fold_fc_bn(params['fc2'], params['bn2'])
    w3f, b3f = fold_fc_bn(params['fc3'], params['bn3'])
    w4, b4 = params['fc4']
    w4r = w4.T.astype(jnp.float32)                                 # (1, 256)
    b4r = b4.astype(jnp.float32)                                   # (1, 1)

    # Packed real/imag patches in one lane-denser (N, 32) array (one DMA per tile).
    p_packed = jnp.concatenate([p1.real, p1.imag], axis=1).astype(jnp.float32)

    # ---------------- batch tiling ----------------
    n_pad8 = ((N + 7) // 8) * 8
    tile_n = min(tile_n, n_pad8)                 # tile_n stays a multiple of 8
    n_pad = pl.cdiv(n_pad8, tile_n) * tile_n
    if n_pad != N:
        p_packed = jnp.pad(p_packed, ((0, n_pad - N), (0, 0)))

    grid = (n_pad // tile_n,)
    const = lambda i: (0, 0)                     # weights resident across grid steps
    in_specs = [
        pl.BlockSpec((tile_n, 32), lambda i: (i, 0)),              # packed patches
        pl.BlockSpec(wc.shape, const),
        pl.BlockSpec(w1f.shape, const), pl.BlockSpec(b1f.shape, const),
        pl.BlockSpec(w2f.shape, const), pl.BlockSpec(b2f.shape, const),
        pl.BlockSpec(w3f.shape, const), pl.BlockSpec(b3f.shape, const),
        pl.BlockSpec(w4r.shape, const), pl.BlockSpec(b4r.shape, const),
    ]
    out_specs = pl.BlockSpec((tile_n, 1), lambda i: (i, 0))

    out = pl.pallas_call(
        cnn_kernel,
        grid=grid,
        in_specs=in_specs,
        out_specs=out_specs,
        out_shape=jax.ShapeDtypeStruct((n_pad, 1), jnp.float32),
        compiler_params=pltpu.CompilerParams(
            dimension_semantics=("parallel",),       # shards batch across v7x's 2 TCs
            vmem_limit_bytes=48 * 1024 * 1024),
    )(p_packed, wc, w1f, b1f, w2f, b2f, w3f, b3f, w4r, b4r)
    return out[:N, 0]                              # y_hat.squeeze()


def reference(x, params):
    """Pure-JAX f32 reference of the PyTorch forward (eval mode)."""
    w1 = params['w_conv1']
    w2 = params['w_conv2']
    N = x.shape[0]
    a1 = jnp.stack([jnp.stack([
        jnp.einsum('nchw,ochw->no', x[:, :, i:i + 2, j:j + 2], w1)
        for j in range(2)], axis=-1) for i in range(2)], axis=-2)   # (N, 8, 2, 2)
    a2 = jnp.einsum('nchw,ochw->no', a1, w2)                        # (N, 16)
    h = jnp.abs(a2).astype(jnp.float32)

    def fc_bn_relu(h, fc, bnp):
        w, b = fc
        z = h @ w + b
        gamma, beta, mean, var = bnp[0:1], bnp[1:2], bnp[2:3], bnp[3:4]
        z = (z - mean) * gamma / jnp.sqrt(var + BN_EPS) + beta
        return jnp.maximum(z, 0.0)

    h = fc_bn_relu(h, params['fc1'], params['bn1'])
    h = fc_bn_relu(h, params['fc2'], params['bn2'])
    h = fc_bn_relu(h, params['fc3'], params['bn3'])
    w4, b4 = params['fc4']
    return (h @ w4 + b4).reshape(N)


if __name__ == "__main__":
    key = jax.random.PRNGKey(0)
    kp, kxr, kxi = jax.random.split(key, 3)
    params = init_params(kp)

    N = 8
    x = (jax.random.normal(kxr, (N, 1, 3, 3), jnp.float32)
         + 1j * jax.random.normal(kxi, (N, 1, 3, 3), jnp.float32)).astype(jnp.complex64)

    y = jax.block_until_ready(cnn_forward(x, params))
    y_ref = reference(x, params)

    assert y.shape == (N,), y.shape
    assert jnp.allclose(y, y_ref, rtol=5e-2, atol=5e-2), (y, y_ref)
    print("KERNEL_OK")
</pallas_src>

<mosaic_0001>
module attributes {stable_mosaic.version = 11 : i64} {
  func.func @cnn_kernel(%arg0: i32, %arg1: memref<8x32xf32, #tpu.memory_space<vmem>>, %arg2: memref<32x32xf32, #tpu.memory_space<vmem>>, %arg3: memref<16x1024xbf16, #tpu.memory_space<vmem>>, %arg4: memref<1x1024xf32, #tpu.memory_space<vmem>>, %arg5: memref<1024x512xbf16, #tpu.memory_space<vmem>>, %arg6: memref<1x512xf32, #tpu.memory_space<vmem>>, %arg7: memref<512x256xbf16, #tpu.memory_space<vmem>>, %arg8: memref<1x256xf32, #tpu.memory_space<vmem>>, %arg9: memref<1x256xf32, #tpu.memory_space<vmem>>, %arg10: memref<1x1xf32, #tpu.memory_space<vmem>>, %arg11: memref<8x1xf32, #tpu.memory_space<vmem>>) attributes {dimension_semantics = [#tpu.dimension_semantics<parallel>], iteration_bounds = array<i64: 1>, scalar_prefetch = 0 : i64, scratch_operands = 0 : i64, tpu.core_type = #tpu.core_type<tc>, window_params = [{transform_indices = @transform_0, window_bounds = array<i64: 8, 32>}, {pipeline_mode = #tpu.pipeline_mode<synchronous>, transform_indices = @transform_1, window_bounds = array<i64: 32, 32>}, {pipeline_mode = #tpu.pipeline_mode<synchronous>, transform_indices = @transform_2, window_bounds = array<i64: 16, 1024>}, {pipeline_mode = #tpu.pipeline_mode<synchronous>, transform_indices = @transform_3, window_bounds = array<i64: 1, 1024>}, {pipeline_mode = #tpu.pipeline_mode<synchronous>, transform_indices = @transform_4, window_bounds = array<i64: 1024, 512>}, {pipeline_mode = #tpu.pipeline_mode<synchronous>, transform_indices = @transform_5, window_bounds = array<i64: 1, 512>}, {pipeline_mode = #tpu.pipeline_mode<synchronous>, transform_indices = @transform_6, window_bounds = array<i64: 512, 256>}, {pipeline_mode = #tpu.pipeline_mode<synchronous>, transform_indices = @transform_7, window_bounds = array<i64: 1, 256>}, {pipeline_mode = #tpu.pipeline_mode<synchronous>, transform_indices = @transform_8, window_bounds = array<i64: 1, 256>}, {pipeline_mode = #tpu.pipeline_mode<synchronous>, transform_indices = @transform_9, window_bounds = array<i64: 1, 1>}, {transform_indices = @transform_10, window_bounds = array<i64: 8, 1>}]} {
    %c0 = arith.constant 0 : index
    %c0_0 = arith.constant 0 : index
    %0 = vector.load %arg1[%c0, %c0_0] : memref<8x32xf32, #tpu.memory_space<vmem>>, vector<8x32xf32>
    %c0_1 = arith.constant 0 : index
    %c0_2 = arith.constant 0 : index
    %1 = vector.load %arg2[%c0_1, %c0_2] : memref<32x32xf32, #tpu.memory_space<vmem>>, vector<32x32xf32>
    %cst = arith.constant dense<0.000000e+00> : vector<8x32xf32>
    %2 = tpu.matmul %0, %1, %cst {dimension_numbers = #tpu.dot_dimension_numbers<[1], [0], [0], [1], [0, 0, 1, 1], [], []>} : vector<8x32xf32>, vector<32x32xf32>, vector<8x32xf32> -> vector<8x32xf32>
    %3 = vector.extract_strided_slice %2 {offsets = [0, 0], sizes = [8, 16], strides = [1, 1]} : vector<8x32xf32> to vector<8x16xf32>
    %4 = vector.extract_strided_slice %2 {offsets = [0, 16], sizes = [8, 16], strides = [1, 1]} : vector<8x32xf32> to vector<8x16xf32>
    %5 = arith.mulf %3, %3 : vector<8x16xf32>
    %6 = arith.mulf %4, %4 : vector<8x16xf32>
    %7 = arith.addf %5, %6 : vector<8x16xf32>
    %8 = math.sqrt %7 : vector<8x16xf32>
    %9 = arith.truncf %8 : vector<8x16xf32> to vector<8x16xbf16>
    %c0_3 = arith.constant 0 : index
    %c0_4 = arith.constant 0 : index
    %10 = vector.load %arg3[%c0_3, %c0_4] : memref<16x1024xbf16, #tpu.memory_space<vmem>>, vector<16x1024xbf16>
    %cst_5 = arith.constant dense<0.000000e+00> : vector<8x1024xf32>
    %11 = tpu.matmul %9, %10, %cst_5 {dimension_numbers = #tpu.dot_dimension_numbers<[1], [0], [0], [1], [0, 0, 1, 1], [], []>} : vector<8x16xbf16>, vector<16x1024xbf16>, vector<8x1024xf32> -> vector<8x1024xf32>
    %c0_6 = arith.constant 0 : index
    %c0_7 = arith.constant 0 : index
    %12 = vector.load %arg4[%c0_6, %c0_7] : memref<1x1024xf32, #tpu.memory_space<vmem>>, vector<1x1024xf32>
    %13 = vector.broadcast %12 : vector<1x1024xf32> to vector<8x1024xf32>
    %14 = arith.addf %11, %13 : vector<8x1024xf32>
    %cst_8 = arith.constant 0.000000e+00 : f32
    %15 = vector.broadcast %cst_8 : f32 to vector<8x1024xf32>
    %16 = arith.maximumf %14, %15 : vector<8x1024xf32>
    %17 = arith.truncf %16 : vector<8x1024xf32> to vector<8x1024xbf16>
    %c0_9 = arith.constant 0 : index
    %c0_10 = arith.constant 0 : index
    %18 = vector.load %arg5[%c0_9, %c0_10] : memref<1024x512xbf16, #tpu.memory_space<vmem>>, vector<1024x512xbf16>
    %cst_11 = arith.constant dense<0.000000e+00> : vector<8x512xf32>
    %19 = tpu.matmul %17, %18, %cst_11 {dimension_numbers = #tpu.dot_dimension_numbers<[1], [0], [0], [1], [0, 0, 1, 1], [], []>} : vector<8x1024xbf16>, vector<1024x512xbf16>, vector<8x512xf32> -> vector<8x512xf32>
    %c0_12 = arith.constant 0 : index
    %c0_13 = arith.constant 0 : index
    %20 = vector.load %arg6[%c0_12, %c0_13] : memref<1x512xf32, #tpu.memory_space<vmem>>, vector<1x512xf32>
    %21 = vector.broadcast %20 : vector<1x512xf32> to vector<8x512xf32>
    %22 = arith.addf %19, %21 : vector<8x512xf32>
    %cst_14 = arith.constant 0.000000e+00 : f32
    %23 = vector.broadcast %cst_14 : f32 to vector<8x512xf32>
    %24 = arith.maximumf %22, %23 : vector<8x512xf32>
    %25 = arith.truncf %24 : vector<8x512xf32> to vector<8x512xbf16>
    %c0_15 = arith.constant 0 : index
    %c0_16 = arith.constant 0 : index
    %26 = vector.load %arg7[%c0_15, %c0_16] : memref<512x256xbf16, #tpu.memory_space<vmem>>, vector<512x256xbf16>
    %cst_17 = arith.constant dense<0.000000e+00> : vector<8x256xf32>
    %27 = tpu.matmul %25, %26, %cst_17 {dimension_numbers = #tpu.dot_dimension_numbers<[1], [0], [0], [1], [0, 0, 1, 1], [], []>} : vector<8x512xbf16>, vector<512x256xbf16>, vector<8x256xf32> -> vector<8x256xf32>
    %c0_18 = arith.constant 0 : index
    %c0_19 = arith.constant 0 : index
    %28 = vector.load %arg8[%c0_18, %c0_19] : memref<1x256xf32, #tpu.memory_space<vmem>>, vector<1x256xf32>
    %29 = vector.broadcast %28 : vector<1x256xf32> to vector<8x256xf32>
    %30 = arith.addf %27, %29 : vector<8x256xf32>
    %cst_20 = arith.constant 0.000000e+00 : f32
    %31 = vector.broadcast %cst_20 : f32 to vector<8x256xf32>
    %32 = arith.maximumf %30, %31 : vector<8x256xf32>
    %33 = arith.truncf %32 : vector<8x256xf32> to vector<8x256xbf16>
    %34 = arith.extf %33 : vector<8x256xbf16> to vector<8x256xf32>
    %c0_21 = arith.constant 0 : index
    %c0_22 = arith.constant 0 : index
    %35 = vector.load %arg9[%c0_21, %c0_22] : memref<1x256xf32, #tpu.memory_space<vmem>>, vector<1x256xf32>
    %36 = vector.broadcast %35 : vector<1x256xf32> to vector<8x256xf32>
    %37 = arith.mulf %34, %36 : vector<8x256xf32>
    %cst_23 = arith.constant dense<0.000000e+00> : vector<8xf32>
    %38 = vector.multi_reduction <add>, %37, %cst_23 [1] : vector<8x256xf32> to vector<8xf32>
    %39 = vector.shape_cast %38 : vector<8xf32> to vector<8x1xf32>
    %c0_24 = arith.constant 0 : index
    %c0_25 = arith.constant 0 : index
    %40 = vector.load %arg10[%c0_24, %c0_25] : memref<1x1xf32, #tpu.memory_space<vmem>>, vector<1x1xf32>
    %41 = vector.broadcast %40 : vector<1x1xf32> to vector<8x1xf32>
    %42 = arith.addf %39, %41 : vector<8x1xf32>
    %c0_26 = arith.constant 0 : index
    %c0_27 = arith.constant 0 : index
    %43 = vector.load %arg11[%c0_26, %c0_27] : memref<8x1xf32, #tpu.memory_space<vmem>>, vector<8x1xf32>
    tpu.vector_store %arg11[%c0_26, %c0_27], %42 {strides = array<i32>} : memref<8x1xf32, #tpu.memory_space<vmem>>, vector<8x1xf32>,
    return
  }
  func.func @transform_0(%arg0: i32) -> (i32, i32) {
    %c0_i32 = arith.constant 0 : i32
    %c0_i32_0 = arith.constant 0 : i32
    return %arg0, %c0_i32 : i32, i32
  }
  func.func @transform_1(%arg0: i32) -> (i32, i32) {
    %c0_i32 = arith.constant 0 : i32
    %c0_i32_0 = arith.constant 0 : i32
    %c0_i32_1 = arith.constant 0 : i32
    return %c0_i32, %c0_i32_0 : i32, i32
  }
  func.func @transform_2(%arg0: i32) -> (i32, i32) {
    %c0_i32 = arith.constant 0 : i32
    %c0_i32_0 = arith.constant 0 : i32
    %c0_i32_1 = arith.constant 0 : i32
    return %c0_i32, %c0_i32_0 : i32, i32
  }
  func.func @transform_3(%arg0: i32) -> (i32, i32) {
    %c0_i32 = arith.constant 0 : i32
    %c0_i32_0 = arith.constant 0 : i32
    %c0_i32_1 = arith.constant 0 : i32
    return %c0_i32, %c0_i32_0 : i32, i32
  }
  func.func @transform_4(%arg0: i32) -> (i32, i32) {
    %c0_i32 = arith.constant 0 : i32
    %c0_i32_0 = arith.constant 0 : i32
    %c0_i32_1 = arith.constant 0 : i32
    return %c0_i32, %c0_i32_0 : i32, i32
  }
  func.func @transform_5(%arg0: i32) -> (i32, i32) {
    %c0_i32 = arith.constant 0 : i32
    %c0_i32_0 = arith.constant 0 : i32
    %c0_i32_1 = arith.constant 0 : i32
    return %c0_i32, %c0_i32_0 : i32, i32
  }
  func.func @transform_6(%arg0: i32) -> (i32, i32) {
    %c0_i32 = arith.constant 0 : i32
    %c0_i32_0 = arith.constant 0 : i32
    %c0_i32_1 = arith.constant 0 : i32
    return %c0_i32, %c0_i32_0 : i32, i32
  }
  func.func @transform_7(%arg0: i32) -> (i32, i32) {
    %c0_i32 = arith.constant 0 : i32
    %c0_i32_0 = arith.constant 0 : i32
    %c0_i32_1 = arith.constant 0 : i32
    return %c0_i32, %c0_i32_0 : i32, i32
  }
  func.func @transform_8(%arg0: i32) -> (i32, i32) {
    %c0_i32 = arith.constant 0 : i32
    %c0_i32_0 = arith.constant 0 : i32
    %c0_i32_1 = arith.constant 0 : i32
    return %c0_i32, %c0_i32_0 : i32, i32
  }
  func.func @transform_9(%arg0: i32) -> (i32, i32) {
    %c0_i32 = arith.constant 0 : i32
    %c0_i32_0 = arith.constant 0 : i32
    %c0_i32_1 = arith.constant 0 : i32
    return %c0_i32, %c0_i32_0 : i32, i32
  }
  func.func @transform_10(%arg0: i32) -> (i32, i32) {
    %c0_i32 = arith.constant 0 : i32
    %c0_i32_0 = arith.constant 0 : i32
    return %arg0, %c0_i32 : i32, i32
  }
}

</mosaic_0001>

<bundles_post_ra>
// kernel: tpu_custom_call.1
= control target key start
LH: loop header
LB: loop body
LE: loop exit
PB: predicated region body
PF: predicated region fallthrough
CT: control target
= control target key end

     0   :  { %s4134_s0 = inlined_call_operand.hbm [shape: f32[8,32], index: 0, kind: input, shape index: {}]   ;;  %s4135_s1 = inlined_call_operand.hbm [shape: f32[32,32], index: 1, kind: input, shape index: {}]   ;;  %s4136_s2 = inlined_call_operand.hbm [shape: bf16[16,1024], index: 2, kind: input, shape index: {}]   ;;  %s4137_s3 = inlined_call_operand.vmem [shape: f32[1,1024], index: 3, kind: input, shape index: {}]   ;;  %s4138_s4 = inlined_call_operand.hbm [shape: bf16[1024,512], index: 4, kind: input, shape index: {}]   ;;  %s4139_s5 = inlined_call_operand.vmem [shape: f32[1,512], index: 5, kind: input, shape index: {}]   ;;  %s4140_s6 = inlined_call_operand.hbm [shape: bf16[512,256], index: 6, kind: input, shape index: {}]   ;;  %s4141_s7 = inlined_call_operand.vmem [shape: f32[1,256], index: 7, kind: input, shape index: {}]   ;;  %s4142_s8 = inlined_call_operand.vmem [shape: f32[1,256], index: 8, kind: input, shape index: {}]   ;;  %s4143_s9 = inlined_call_operand.<no memory space> [shape: f32[1,1], index: 9, kind: input, shape index: {}]   ;;  %s4144_s10 = inlined_call_operand.vmem [shape: f32[8,1], index: 10, kind: output, shape index: {}]  }
   0x1   :  { %v15_v0 = vstv %s4143_s9 }
   0x2   :  { %16 = vst [vmem:[#allocation2] sm:$0x1] %v15_v0 }
   0x3   :  { %17 = vsyncpa [#allocation4], 0 }
   0x4   :  { %18 = vsyncpa [#allocation6], 0 }
   0x5   :  { %19 = vsyncpa [#allocation9], 0  ;;  %s3885_s15 = smov [#allocation5]   ;;  %s3769_s19 = scalar_lea.hbm %s4135_s1, 512 }
   0x6   :  { %s35_s16 = sshll.u32 %s3885_s15, 4  ;;  %p3770_p0 = scmp.ne.s32.totalorder %s4135_s1, %s3769_s19  ;;  %s36_s16 = int_to_ptr.vmem [resolvable:$true] %s35_s16 }
   0x7   :  { %p3773_p1 = scmp.lt.u32.totalorder %s3769_s19, %s4135_s1 }
   0x9   :  { %p3775_p2 = pnand %p3773_p1, %p3770_p0 }
   0xb   :  { %3778 = shalt.err (!%p3775_p2)
}
   0xc   :  { %s3779_s9 = scalar_lea.vmem %s36_s16, 512  ;;  %p3784_p4 = scmp.lt.s32.totalorder %s36_s16, %s36_s16 }
   0xd   :  { %p3780_p3 = scmp.ne.s32.totalorder %s36_s16, %s3779_s9  ;;  %p3785_p5 = scmp.lt.s32.totalorder %s3779_s9, %s3779_s9 }
   0xf   :  { %p3786_p6 = por %p3785_p5, %p3784_p4 }
  0x11   :  { %p3787_p7 = pnand %p3786_p6, %p3780_p3 }
  0x13   :  { %3790 = shalt.err (!%p3787_p7)
}
  0x14   :  { %s3886_s24 = smov 128   ;;  %s3887_s25 = smov 8  }
  0x15   :  { %41 = dma.hbm_to_vmem [thread:$0]  %s4135_s1, 512, %s36_s16, [#allocation6], %s3886_s24, %s3886_s24, %s3887_s25  }
  0x16   :  { %s3888_s28 = smov [#allocation8]   ;;  %s3791_s12 = scalar_lea.hbm %s4138_s4, 32768 }
  0x17   :  { %s61_s29 = sshll.u32 %s3888_s28, 4  ;;  %p3792_p8 = scmp.ne.s32.totalorder %s4138_s4, %s3791_s12  ;;  %s62_s29 = int_to_ptr.vmem [resolvable:$true] %s61_s29 }
  0x18   :  { %p3795_p9 = scmp.lt.u32.totalorder %s3791_s12, %s4138_s4 }
  0x1a   :  { %p3797_p10 = pnand %p3795_p9, %p3792_p8 }
  0x1c   :  { %3800 = shalt.err (!%p3797_p10)
}
  0x1d   :  { %s3801_s18 = scalar_lea.vmem %s62_s29, 32768  ;;  %p3806_p12 = scmp.lt.s32.totalorder %s62_s29, %s62_s29 }
  0x1e   :  { %p3802_p11 = scmp.ne.s32.totalorder %s62_s29, %s3801_s18  ;;  %p3807_p13 = scmp.lt.s32.totalorder %s3801_s18, %s3801_s18 }
  0x20   :  { %p3808_p0 = por %p3807_p13, %p3806_p12 }
  0x22   :  { %p3809_p1 = pnand %p3808_p0, %p3802_p11 }
  0x24   :  { %3812 = shalt.err (!%p3809_p1)
}
  0x25   :  { %s3889_s1 = smov 256   ;;  %s3890_s16 = smov 16  }
  0x26   :  { %67 = dma.hbm_to_vmem [thread:$0]  %s4138_s4, 32768, %s62_s29, [#allocation9], %s3889_s1, %s3889_s1, %s3890_s16  }
  0x27   :  { %s3891_s21 = smov [#allocation3]   ;;  %s3892_s23 = smov [#allocation7]  }
  0x28   :  { %s26_s22 = sshll.u32 %s3891_s21, 4  ;;  %s47_s9 = sshll.u32 %s3892_s23, 4  ;;  %s27_s22 = int_to_ptr.vmem [resolvable:$true] %s26_s22  ;;  %s3986_s9 = int_to_ptr.vmem [resolvable:$true] %s47_s9 }
  0x29   :  { %s3813_s28 = scalar_lea.hbm %s4134_s0, 128 }
  0x2a   :  { %p3814_p2 = scmp.ne.s32.totalorder %s4134_s0, %s3813_s28  ;;  %p3817_p3 = scmp.lt.u32.totalorder %s3813_s28, %s4134_s0 }
  0x2c   :  { %p3819_p4 = pnand %p3817_p3, %p3814_p2 }
  0x2e   :  { %3822 = shalt.err (!%p3819_p4)
}
  0x2f   :  { %s3823_s4 = scalar_lea.vmem %s27_s22, 128  ;;  %p3828_p6 = scmp.lt.s32.totalorder %s27_s22, %s27_s22 }
  0x30   :  { %p3824_p5 = scmp.ne.s32.totalorder %s27_s22, %s3823_s4  ;;  %p3829_p7 = scmp.lt.s32.totalorder %s3823_s4, %s3823_s4 }
  0x32   :  { %p3830_p8 = por %p3829_p7, %p3828_p6 }
  0x34   :  { %p3831_p9 = pnand %p3830_p8, %p3824_p5 }
  0x36   :  { %3834 = shalt.err (!%p3831_p9)
}
  0x37   :  { %29 = dma.hbm_to_vmem [thread:$0]  %s4134_s0, 128, %s27_s22, [#allocation4]  }
  0x38   :  { %s3835_s18 = scalar_lea.hbm %s4136_s2, 1024 }
  0x39   :  { %p3836_p10 = scmp.ne.s32.totalorder %s4136_s2, %s3835_s18  ;;  %p3839_p11 = scmp.lt.u32.totalorder %s3835_s18, %s4136_s2 }
  0x3b   :  { %p3841_p12 = pnand %p3839_p11, %p3836_p10 }
  0x3d   :  { %3844 = shalt.err (!%p3841_p12)
}
  0x3e   :  { %s3845_s21 = scalar_lea.vmem %s3986_s9, 1024  ;;  %p3850_p0 = scmp.lt.s32.totalorder %s3986_s9, %s3986_s9 }
  0x3f   :  { %p3846_p13 = scmp.ne.s32.totalorder %s3986_s9, %s3845_s21  ;;  %p3851_p1 = scmp.lt.s32.totalorder %s3845_s21, %s3845_s21 }
  0x41   :  { %p3852_p2 = por %p3851_p1, %p3850_p0 }
  0x43   :  { %p3853_p3 = pnand %p3852_p2, %p3846_p13 }
  0x45   :  { %3856 = shalt.err (!%p3853_p3)
}
  0x46   :  { %s3893_s0 = smov 512   ;;  %s3894_s22 = smov 32  }
  0x47   :  { %53 = dma.hbm_to_vmem [thread:$0]  %s4136_s2, 1024, %s3986_s9, [#allocation6], %s3893_s0, %s3893_s0, %s3894_s22  }
  0x48   :  { %s3895_s27 = smov [#allocation10]   ;;  %s3857_s12 = scalar_lea.hbm %s4140_s6, 8192 }
  0x49   :  { %s75_s28 = sshll.u32 %s3895_s27, 4  ;;  %p3858_p4 = scmp.ne.s32.totalorder %s4140_s6, %s3857_s12  ;;  %s76_s28 = int_to_ptr.vmem [resolvable:$true] %s75_s28 }
  0x4a   :  { %p3861_p5 = scmp.lt.u32.totalorder %s3857_s12, %s4140_s6 }
  0x4c   :  { %p3863_p6 = pnand %p3861_p5, %p3858_p4 }
  0x4e   :  { %3866 = shalt.err (!%p3863_p6)
}
  0x4f   :  { %s3867_s15 = scalar_lea.vmem %s76_s28, 8192  ;;  %p3872_p8 = scmp.lt.s32.totalorder %s76_s28, %s76_s28 }
  0x50   :  { %p3868_p7 = scmp.ne.s32.totalorder %s76_s28, %s3867_s15  ;;  %p3873_p9 = scmp.lt.s32.totalorder %s3867_s15, %s3867_s15 }
  0x52   :  { %p3874_p10 = por %p3873_p9, %p3872_p8 }
  0x54   :  { %p3875_p11 = pnand %p3874_p10, %p3868_p7 }
  0x56   :  { %3878 = shalt.err (!%p3875_p11)
}
  0x57   :  { %81 = dma.hbm_to_vmem [thread:$0]  %s4140_s6, 8192, %s76_s28, [#allocation9], %s3886_s24, %s3886_s24, %s3887_s25  }
  0x58   :  { %3879 = dma.done.wait [#allocation4], 128  }
  0x59   :  { %3880 = vsyncadd [#allocation4], 4294967168 }
  0x5a   :  { %3881 = dma.done.wait [#allocation6], 1536  }
  0x5b   :  { %3882 = vsyncadd [#allocation6], 4294965760 }
  0x5c   :  { %3883 = dma.done.wait [#allocation9], 40960  }
  0x5d   :  { %3884 = vsyncadd [#allocation9], 4294926336  ;;  %v3896_v1 = vmov 0.0|0.0   ;;  %vm3897_vm0 = vmmov 0   ;;  %v3898_v2 = vmov 0.0   ;;  %v105_v3 = vld [vmem:[#allocation5] sm:$0xff] }
  0x5e   :  { %3233 = vmatprep.subr.bf16.mxu0 %v3896_v1  ;;  %3230 = vmatprep.mubr.msk.f32.mxu0 %vm3897_vm0, %v3898_v2  ;;  %v106_v4 = vld [vmem:[#allocation5 + $0x8] sm:$0xff]  ;;  %v107_v5 = vld [vmem:[#allocation5 + $0x10] sm:$0xff]  ;;  %v108_v7 = vld [vmem:[#allocation5 + $0x18] sm:$0xff]  ;;  %vm109_vm1 = vcmask 261120   ;;  %v3899_v16 = vmov 0   ;;  %s3900_s6 = smov 112  }
  0x5f   :  { %v3234_v6 = vpack.c.bf16 %v106_v4, %v105_v3  ;;  %v3237_v8 = vpack.c.bf16 %v108_v7, %v107_v5  ;;  %v104_v9 = vld [vmem:[#allocation3] sm:$0xff]  ;;  %v197_v10 = vld [vmem:[#allocation7] sm:$0xff]  ;;  %v198_v12 = vld [vmem:[#allocation7 + $0x8] sm:$0xff]  ;;  %323 = vmatprep.mubr.bf16.mxu1 %v3899_v16  ;;  %vm287_vm4 = vcmask 130048   ;;  %vm2874_vm5 = vcmask 7168  }
  0x60   :  { %v201_v11 = vld [vmem:[#allocation7 + $0x20] sm:$0xff]  ;;  %v202_v14 = vld [vmem:[#allocation7 + $0x28] sm:$0xff]  ;;  %v199_v22 = vld [vmem:[#allocation7 + $0x10] sm:$0xff] }
  0x61   :  { %3235 = vmatpush3.bf16.msra.mxu0 %v3234_v6  ;;  %v2885_v13 = vcombine.high %v197_v10, %v201_v11  ;;  %v2884_v15 = vcombine.low %v197_v10, %v201_v11  ;;  %v2886_v17 = vcombine.low %v198_v12, %v202_v14  ;;  %v2887_v18 = vcombine.high %v198_v12, %v202_v14  ;;  %v203_v23 = vld [vmem:[#allocation7 + $0x30] sm:$0xff]  ;;  %v200_v24 = vld [vmem:[#allocation7 + $0x18] sm:$0xff] }
  0x62   :  { %3236 = vmatprep.subr.bf16.mxu0 %v3896_v1  ;;  %v2888_v25 = vcombine.low %v199_v22, %v203_v23  ;;  %v2889_v26 = vcombine.high %v199_v22, %v203_v23  ;;  %v204_v27 = vld [vmem:[#allocation7 + $0x38] sm:$0xff]  ;;  %v3289_v38 = vld [vmem:[#allocation8 + $0x4] ss:$16 sps:$4 sm:$0xff]   ;;  %v3287_v40 = vld [vmem:[#allocation8] ss:$16 sps:$4 sm:$0xff]  }
  0x63   :  { %291 = vmatprep.subr.bf16.mxu1 %v2885_v13  ;;  %v2890_v28 = vcombine.low %v200_v24, %v204_v27  ;;  %v2891_v29 = vcombine.high %v200_v24, %v204_v27  ;;  %v3292_v39 = vld [vmem:[#allocation8 + $0x204] ss:$16 sps:$4 sm:$0xff]   ;;  %v3290_v41 = vld [vmem:[#allocation8 + $0x200] ss:$16 sps:$4 sm:$0xff]  }
  0x64   :  { %292 = vmatpush1.bf16.msra.mxu1 %v2884_v15  ;;  %v3295_v42 = vld [vmem:[#allocation8 + $0x24] ss:$16 sps:$4 sm:$0xff]   ;;  %v3293_v44 = vld [vmem:[#allocation8 + $0x20] ss:$16 sps:$4 sm:$0xff]  }
  0x65   :  { %3238 = vmatpush3.bf16.msra.mxu0 %v3237_v8  ;;  %373 = vmatprep.subr.bf16.mxu1 %v2889_v26  ;;  %v3298_v43 = vld [vmem:[#allocation8 + $0x224] ss:$16 sps:$4 sm:$0xff]   ;;  %v3296_v45 = vld [vmem:[#allocation8 + $0x220] ss:$16 sps:$4 sm:$0xff]  }
  0x66   :  { %332 = vmatprep.subr.bf16.mxu0 %v2887_v18  ;;  %v3301_v46 = vld [vmem:[#allocation8 + $0x44] ss:$16 sps:$4 sm:$0xff]   ;;  %v3299_v48 = vld [vmem:[#allocation8 + $0x40] ss:$16 sps:$4 sm:$0xff]  }
  0x67   :  { %v3304_v47 = vld [vmem:[#allocation8 + $0x244] ss:$16 sps:$4 sm:$0xff]   ;;  %v3302_v49 = vld [vmem:[#allocation8 + $0x240] ss:$16 sps:$4 sm:$0xff]  }
  0x68   :  { %3231 = vmatmul.mubr.msk.f32.vlgmr.msra.gmra.mrb[0].mxu0 %vm109_vm1, %v104_v9  ;;  %v3307_v50 = vld [vmem:[#allocation8 + $0x64] ss:$16 sps:$4 sm:$0xff]   ;;  %v3305_v52 = vld [vmem:[#allocation8 + $0x60] ss:$16 sps:$4 sm:$0xff]  }
  0x69   :  { %364 = vmatprep.mubr.bf16.mxu0 %v3899_v16  ;;  %333 = vmatpush1.bf16.msra.mxu0 %v2886_v17  ;;  %v3310_v51 = vld [vmem:[#allocation8 + $0x264] ss:$16 sps:$4 sm:$0xff]   ;;  %v3308_v53 = vld [vmem:[#allocation8 + $0x260] ss:$16 sps:$4 sm:$0xff]  }
  0x6a   :  { %414 = vmatprep.subr.bf16.mxu0 %v2891_v29  ;;  %v3313_v54 = vld [vmem:[#allocation8 + $0x84] ss:$16 sps:$4 sm:$0xff]   ;;  %v3311_v56 = vld [vmem:[#allocation8 + $0x80] ss:$16 sps:$4 sm:$0xff]  }
  0x6b   :  { %v3316_v55 = vld [vmem:[#allocation8 + $0x284] ss:$16 sps:$4 sm:$0xff]   ;;  %v3314_v57 = vld [vmem:[#allocation8 + $0x280] ss:$16 sps:$4 sm:$0xff]  }
  0x6c   :  { %v3319_v58 = vld [vmem:[#allocation8 + $0xa4] ss:$16 sps:$4 sm:$0xff]   ;;  %v3317_v60 = vld [vmem:[#allocation8 + $0xa0] ss:$16 sps:$4 sm:$0xff]  }
  0x6d   :  { %v3322_v59 = vld [vmem:[#allocation8 + $0x2a4] ss:$16 sps:$4 sm:$0xff]   ;;  %v3320_v61 = vld [vmem:[#allocation8 + $0x2a0] ss:$16 sps:$4 sm:$0xff]  }
  0x6e   :  { %v3325_v62 = vld [vmem:[#allocation8 + $0xc4] ss:$16 sps:$4 sm:$0xff]   ;;  %v3323_v0 = vld [vmem:[#allocation8 + $0xc0] ss:$16 sps:$4 sm:$0xff]  }
  0x6f   :  { %v3328_v63 = vld [vmem:[#allocation8 + $0x2c4] ss:$16 sps:$4 sm:$0xff]   ;;  %v3326_v1 = vld [vmem:[#allocation8 + $0x2c0] ss:$16 sps:$4 sm:$0xff]  }
  0x70   :  { %v3331_v2 = vld [vmem:[#allocation8 + $0xe4] ss:$16 sps:$4 sm:$0xff]   ;;  %v3329_v4 = vld [vmem:[#allocation8 + $0xe0] ss:$16 sps:$4 sm:$0xff]  }
  0x71   :  { %v3334_v3 = vld [vmem:[#allocation8 + $0x2e4] ss:$16 sps:$4 sm:$0xff]   ;;  %v3332_v5 = vld [vmem:[#allocation8 + $0x2e0] ss:$16 sps:$4 sm:$0xff]  }
  0x72   :  { %v3337_v6 = vld [vmem:[#allocation8 + $0x104] ss:$16 sps:$4 sm:$0xff]   ;;  %v3335_v8 = vld [vmem:[#allocation8 + $0x100] ss:$16 sps:$4 sm:$0xff]  }
  0x73   :  { %v3340_v7 = vld [vmem:[#allocation8 + $0x304] ss:$16 sps:$4 sm:$0xff]   ;;  %v3338_v9 = vld [vmem:[#allocation8 + $0x300] ss:$16 sps:$4 sm:$0xff]  }
  0x74   :  { %v3343_v10 = vld [vmem:[#allocation8 + $0x124] ss:$16 sps:$4 sm:$0xff]   ;;  %v3341_v12 = vld [vmem:[#allocation8 + $0x120] ss:$16 sps:$4 sm:$0xff]  }
  0x75   :  { %v3346_v11 = vld [vmem:[#allocation8 + $0x324] ss:$16 sps:$4 sm:$0xff]   ;;  %v3344_v13 = vld [vmem:[#allocation8 + $0x320] ss:$16 sps:$4 sm:$0xff]  }
  0x76   :  { %v3349_v14 = vld [vmem:[#allocation8 + $0x144] ss:$16 sps:$4 sm:$0xff]   ;;  %v3350_v17 = vld [vmem:[#allocation8 + $0x340] ss:$16 sps:$4 sm:$0xff]  }
  0x77   :  { %v3352_v15 = vld [vmem:[#allocation8 + $0x344] ss:$16 sps:$4 sm:$0xff]   ;;  %v3359_v24 = vld [vmem:[#allocation8 + $0x180] ss:$16 sps:$4 sm:$0xff]  }
  0x78   :  { %v3355_v18 = vld [vmem:[#allocation8 + $0x164] ss:$16 sps:$4 sm:$0xff]   ;;  %v3368_v29 = vld [vmem:[#allocation8 + $0x3a0] ss:$16 sps:$4 sm:$0xff]  }
  0x79   :  { %v3361_v22 = vld [vmem:[#allocation8 + $0x184] ss:$16 sps:$4 sm:$0xff]  }
  0x7a   :  { %v3364_v23 = vld [vmem:[#allocation8 + $0x384] ss:$16 sps:$4 sm:$0xff]  }
  0x7b   :  { %v3367_v26 = vld [vmem:[#allocation8 + $0x1a4] ss:$16 sps:$4 sm:$0xff]  }
  0x7c   :  { %v3370_v27 = vld [vmem:[#allocation8 + $0x3a4] ss:$16 sps:$4 sm:$0xff]  }
 0x13b   :  { %v179_v19 = vpop.f32.mrb[0].mxu0 }
 0x13c   :  { %v183_v20 = vmul.f32 %v179_v19, %v179_v19  ;;  %v3232_v21 = vpop.f32.mrb[1].mxu0  ;;  %v3358_v19 = vld [vmem:[#allocation8 + $0x364] ss:$16 sps:$4 sm:$0xff]  }
 0x13d   :  { %v3356_v21 = vld [vmem:[#allocation8 + $0x360] ss:$16 sps:$4 sm:$0xff]  }
 0x13e   :  { %185 = vrot.lane.b32.xlu0 %v183_v20, %s3900_s6 }
 0x1b0   :  { %v186_v30 = vpop.permute.xlu0 %185 }
 0x1b1   :  { %v188_v31 = vadd.f32 %v186_v30, %v183_v20  ;;  %v3353_v20 = vld [vmem:[#allocation8 + $0x160] ss:$16 sps:$4 sm:$0xff]   ;;  %v3373_v30 = vld [vmem:[#allocation8 + $0x1c4] ss:$16 sps:$4 sm:$0xff]  }
 0x1b3   :  { %3767 = vrsqrt.f32 %v188_v31  ;;  %vm191_vm2 = vcmp.eq.f32.partialorder %v188_v31, inf  ;;  %v194_v34 = vand.u32 2147483648, %v188_v31  ;;  %vm193_vm3 = vcmp.eq.f32.partialorder %v188_v31, 0.0 }
 0x1bd   :  { %v3768_v32 = vpop.eup %3767 }
 0x1be   :  { %v190_v33 = vmul.f32 %v3768_v32, %v188_v31  ;;  %v3371_v32 = vld [vmem:[#allocation8 + $0x1c0] ss:$16 sps:$4 sm:$0xff]  }
 0x1c0   :  { %v192_v35 = vsel %vm191_vm2, %v188_v31, %v190_v33  ;;  %v3376_v31 = vld [vmem:[#allocation8 + $0x3c4] ss:$16 sps:$4 sm:$0xff]   ;;  %v3374_v33 = vld [vmem:[#allocation8 + $0x3c0] ss:$16 sps:$4 sm:$0xff]  }
 0x1c1   :  { %v195_v36 = vsel %vm193_vm3, %v194_v34, %v192_v35  ;;  %v3379_v34 = vld [vmem:[#allocation8 + $0x1e4] ss:$16 sps:$4 sm:$0xff]  }
 0x1c2   :  { %v196_v37 = vpack.c.bf16 %v195_v36, %v195_v36  ;;  %v3382_v35 = vld [vmem:[#allocation8 + $0x3e4] ss:$16 sps:$4 sm:$0xff]   ;;  %v3377_v36 = vld [vmem:[#allocation8 + $0x1e0] ss:$16 sps:$4 sm:$0xff]  }
 0x1c4   :  { %2892 = vmatmul.mubr.msk.bf16.vlgmr.msra.gmra.mrb[0].mxu1 %vm287_vm4, %v196_v37  ;;  %2893 = vmatmul.mubr.msk.bf16.vlgmr.msra.gmra.mrb[4].mxu0 %vm287_vm4, %v196_v37 }
 0x1c5   :  { %374 = vmatpush1.bf16.msra.mxu1 %v2888_v25  ;;  %415 = vmatpush1.bf16.msra.mxu0 %v2890_v28  ;;  %v3362_v25 = vld [vmem:[#allocation8 + $0x380] ss:$16 sps:$4 sm:$0xff]  }
 0x1c6   :  { %405 = vmatprep.mubr.bf16.mxu1 %v3899_v16  ;;  %446 = vmatprep.mubr.bf16.mxu0 %v3899_v16  ;;  %v3347_v16 = vld [vmem:[#allocation8 + $0x140] ss:$16 sps:$4 sm:$0xff]  }
 0x1c7   :  { %2029 = vmatprep.subr.bf16.mxu0 %v3289_v38  ;;  %2070 = vmatprep.subr.bf16.mxu1 %v3292_v39  ;;  %v3365_v28 = vld [vmem:[#allocation8 + $0x1a0] ss:$16 sps:$4 sm:$0xff]   ;;  %v3385_v38 = vld [vmem:[#allocation8 + $0x404] ss:$16 sps:$4 sm:$0xff]   ;;  %v3388_v39 = vld [vmem:[#allocation8 + $0xc] ss:$16 sps:$4 sm:$0xff]  }
 0x1cc   :  { %2894 = vmatmul.mubr.msk.bf16.vlgmr.msra.gmra.mrb[4].mxu1 %vm287_vm4, %v196_v37  ;;  %2895 = vmatmul.mubr.msk.bf16.vlgmr.msra.gmra.mrb[8].mxu0 %vm287_vm4, %v196_v37  ;;  %v3380_v37 = vld [vmem:[#allocation8 + $0x3e0] ss:$16 sps:$4 sm:$0xff]  }
 0x1cd   :  { %2030 = vmatpush1.bf16.msra.mxu0 %v3287_v40  ;;  %2071 = vmatpush1.bf16.msra.mxu1 %v3290_v41  ;;  %v207_v40 = vlaneseq }
 0x1ce   :  { %2031 = vmatprep.subr.bf16.mxu0 %v3295_v42  ;;  %2072 = vmatprep.subr.bf16.mxu1 %v3298_v43 }
 0x1cf   :  { %v4036_v41 = vshrl.u32 %v207_v40, 7  ;;  %v3413_v40 = vld [vmem:[#allocation8 + $0x4a0] ss:$16 sps:$4 sm:$0xff]  }
 0x1d1   :  { %2032 = vmatpush1.bf16.msra.mxu0 %v3293_v44  ;;  %2073 = vmatpush1.bf16.msra.mxu1 %v3296_v45  ;;  %v4039_v42 = vsub.s32 0, %v4036_v41  ;;  %v217_v43 = vsub.s32 2, %v4036_v41  ;;  %v4045_v44 = vld [vmem:[%s4137_s3] sm:$0xff]  ;;  %v4048_v45 = vsub.s32 1, %v4036_v41 }
 0x1d2   :  { %2033 = vmatprep.subr.bf16.mxu0 %v3301_v46  ;;  %2074 = vmatprep.subr.bf16.mxu1 %v3304_v47  ;;  %v221_v46 = vsub.s32 3, %v4036_v41 }
 0x1d3   :  { %v210_v47 = vrot.slane %v4045_v44, %v4039_v42 }
 0x1d5   :  { %2034 = vmatpush1.bf16.msra.mxu0 %v3299_v48  ;;  %2075 = vmatpush1.bf16.msra.mxu1 %v3302_v49  ;;  %v218_v48 = vrot.slane %v4045_v44, %v217_v43  ;;  %v214_v49 = vrot.slane %v4045_v44, %v4048_v45 }
 0x1d6   :  { %2035 = vmatprep.subr.bf16.mxu0 %v3307_v50  ;;  %2076 = vmatprep.subr.bf16.mxu1 %v3310_v51  ;;  %v222_v50 = vrot.slane %v4045_v44, %v221_v46 }
 0x1d9   :  { %2036 = vmatpush1.bf16.msra.mxu0 %v3305_v52  ;;  %2077 = vmatpush1.bf16.msra.mxu1 %v3308_v53 }
 0x1da   :  { %2037 = vmatprep.subr.bf16.mxu0 %v3313_v54  ;;  %2078 = vmatprep.subr.bf16.mxu1 %v3316_v55 }
 0x1dd   :  { %2038 = vmatpush1.bf16.msra.mxu0 %v3311_v56  ;;  %2079 = vmatpush1.bf16.msra.mxu1 %v3314_v57 }
 0x1de   :  { %2039 = vmatprep.subr.bf16.mxu0 %v3319_v58  ;;  %2080 = vmatprep.subr.bf16.mxu1 %v3322_v59 }
 0x1e1   :  { %2040 = vmatpush1.bf16.msra.mxu0 %v3317_v60  ;;  %2081 = vmatpush1.bf16.msra.mxu1 %v3320_v61  ;;  %v229_v61 = vsub.s32 5, %v4036_v41 }
 0x1e2   :  { %2041 = vmatprep.subr.bf16.mxu0 %v3325_v62  ;;  %2082 = vmatprep.subr.bf16.mxu1 %v3328_v63 }
 0x1e5   :  { %2042 = vmatpush1.bf16.msra.mxu0 %v3323_v0  ;;  %2083 = vmatpush1.bf16.msra.mxu1 %v3326_v1 }
 0x1e6   :  { %2043 = vmatprep.subr.bf16.mxu0 %v3331_v2  ;;  %2084 = vmatprep.subr.bf16.mxu1 %v3334_v3 }
 0x1e9   :  { %2044 = vmatpush1.bf16.msra.mxu0 %v3329_v4  ;;  %2085 = vmatpush1.bf16.msra.mxu1 %v3332_v5 }
 0x1ea   :  { %2045 = vmatprep.subr.bf16.mxu0 %v3337_v6  ;;  %2086 = vmatprep.subr.bf16.mxu1 %v3340_v7  ;;  %v3383_v6 = vld [vmem:[#allocation8 + $0x400] ss:$16 sps:$4 sm:$0xff]   ;;  %v3386_v7 = vld [vmem:[#allocation8 + $0x8] ss:$16 sps:$4 sm:$0xff]  }
 0x1ed   :  { %2046 = vmatpush1.bf16.msra.mxu0 %v3335_v8  ;;  %2087 = vmatpush1.bf16.msra.mxu1 %v3338_v9  ;;  %v230_v8 = vrot.slane %v4045_v44, %v229_v61  ;;  %v3442_v61 = vld [vmem:[#allocation8 + $0x12c] ss:$16 sps:$4 sm:$0xff]  }
 0x1ee   :  { %2047 = vmatprep.subr.bf16.mxu0 %v3343_v10  ;;  %2088 = vmatprep.subr.bf16.mxu1 %v3346_v11  ;;  %v3391_v11 = vld [vmem:[#allocation8 + $0x424] ss:$16 sps:$4 sm:$0xff]  }
 0x1f1   :  { %2048 = vmatpush1.bf16.msra.mxu0 %v3341_v12  ;;  %2089 = vmatpush1.bf16.msra.mxu1 %v3344_v13 }
 0x1f2   :  { %2049 = vmatprep.subr.bf16.mxu0 %v3349_v14  ;;  %2090 = vmatprep.subr.bf16.mxu1 %v3352_v15  ;;  %v3394_v14 = vld [vmem:[#allocation8 + $0x2c] ss:$16 sps:$4 sm:$0xff]  }
 0x1f5   :  { %2050 = vmatpush1.bf16.msra.mxu0 %v3347_v16  ;;  %2091 = vmatpush1.bf16.msra.mxu1 %v3350_v17 }
 0x1f6   :  { %2051 = vmatprep.subr.bf16.mxu0 %v3355_v18  ;;  %2092 = vmatprep.subr.bf16.mxu1 %v3358_v19 }
 0x1f9   :  { %2052 = vmatpush1.bf16.msra.mxu0 %v3353_v20  ;;  %2093 = vmatpush1.bf16.msra.mxu1 %v3356_v21  ;;  %v3389_v20 = vld [vmem:[#allocation8 + $0x420] ss:$16 sps:$4 sm:$0xff]   ;;  %v3392_v21 = vld [vmem:[#allocation8 + $0x28] ss:$16 sps:$4 sm:$0xff]  }
 0x1fa   :  { %2053 = vmatprep.subr.bf16.mxu0 %v3361_v22  ;;  %2094 = vmatprep.subr.bf16.mxu1 %v3364_v23 }
 0x1fd   :  { %2054 = vmatpush1.bf16.msra.mxu0 %v3359_v24  ;;  %2095 = vmatpush1.bf16.msra.mxu1 %v3362_v25  ;;  %v3397_v24 = vld [vmem:[#allocation8 + $0x444] ss:$16 sps:$4 sm:$0xff]   ;;  %v3400_v25 = vld [vmem:[#allocation8 + $0x4c] ss:$16 sps:$4 sm:$0xff]  }
 0x1fe   :  { %2055 = vmatprep.subr.bf16.mxu0 %v3367_v26  ;;  %2096 = vmatprep.subr.bf16.mxu1 %v3370_v27 }
 0x201   :  { %2056 = vmatpush1.bf16.msra.mxu0 %v3365_v28  ;;  %2097 = vmatpush1.bf16.msra.mxu1 %v3368_v29  ;;  %v3395_v28 = vld [vmem:[#allocation8 + $0x440] ss:$16 sps:$4 sm:$0xff]   ;;  %v3398_v29 = vld [vmem:[#allocation8 + $0x48] ss:$16 sps:$4 sm:$0xff]  }
 0x202   :  { %2057 = vmatprep.subr.bf16.mxu0 %v3373_v30  ;;  %2098 = vmatprep.subr.bf16.mxu1 %v3376_v31  ;;  %v3403_v30 = vld [vmem:[#allocation8 + $0x464] ss:$16 sps:$4 sm:$0xff]   ;;  %v3406_v31 = vld [vmem:[#allocation8 + $0x6c] ss:$16 sps:$4 sm:$0xff]  }
 0x205   :  { %2058 = vmatpush1.bf16.msra.mxu0 %v3371_v32  ;;  %2099 = vmatpush1.bf16.msra.mxu1 %v3374_v33  ;;  %v3401_v32 = vld [vmem:[#allocation8 + $0x460] ss:$16 sps:$4 sm:$0xff]   ;;  %v3404_v33 = vld [vmem:[#allocation8 + $0x68] ss:$16 sps:$4 sm:$0xff]  }
 0x206   :  { %2059 = vmatprep.subr.bf16.mxu0 %v3379_v34  ;;  %2100 = vmatprep.subr.bf16.mxu1 %v3382_v35  ;;  %v3409_v34 = vld [vmem:[#allocation8 + $0x484] ss:$16 sps:$4 sm:$0xff]   ;;  %v3412_v35 = vld [vmem:[#allocation8 + $0x8c] ss:$16 sps:$4 sm:$0xff]  }
 0x209   :  { %2060 = vmatpush1.bf16.msra.mxu0 %v3377_v36  ;;  %2101 = vmatpush1.bf16.msra.mxu1 %v3380_v37  ;;  %v3407_v36 = vld [vmem:[#allocation8 + $0x480] ss:$16 sps:$4 sm:$0xff]   ;;  %v3410_v37 = vld [vmem:[#allocation8 + $0x88] ss:$16 sps:$4 sm:$0xff]  }
 0x20a   :  { %2111 = vmatprep.subr.bf16.mxu1 %v3385_v38  ;;  %2193 = vmatprep.subr.bf16.mxu0 %v3388_v39  ;;  %v3415_v38 = vld [vmem:[#allocation8 + $0x4a4] ss:$16 sps:$4 sm:$0xff]   ;;  %v3418_v39 = vld [vmem:[#allocation8 + $0xac] ss:$16 sps:$4 sm:$0xff]  }
 0x297   :  { %v325_v51 = vpop.f32.mrb[0].mxu1  ;;  %v366_v52 = vpop.f32.mrb[4].mxu0 }
 0x298   :  { %v326_v53 = vadd.f32 %v325_v51, %v210_v47  ;;  %v367_v54 = vadd.f32 %v366_v52, %v218_v48  ;;  %v327_v55 = vpop.f32.mrb[1].mxu1  ;;  %v368_v56 = vpop.f32.mrb[5].mxu0  ;;  %v3416_v47 = vld [vmem:[#allocation8 + $0xa8] ss:$16 sps:$4 sm:$0xff]   ;;  %v3421_v48 = vld [vmem:[#allocation8 + $0x4c4] ss:$16 sps:$4 sm:$0xff]  }
 0x299   :  { %v328_v57 = vadd.f32 %v327_v55, %v214_v49  ;;  %v369_v58 = vadd.f32 %v368_v56, %v222_v50  ;;  %v329_v59 = vpop.f32.mrb[2].mxu1  ;;  %v370_v60 = vpop.f32.mrb[6].mxu0  ;;  %v3424_v49 = vld [vmem:[#allocation8 + $0xcc] ss:$16 sps:$4 sm:$0xff]   ;;  %v3419_v50 = vld [vmem:[#allocation8 + $0x4c0] ss:$16 sps:$4 sm:$0xff]  }
 0x29a   :  { %v455_v62 = vmax.f32 %v326_v53, 0.0  ;;  %v457_v63 = vmax.f32 %v367_v54, 0.0  ;;  %v330_v0 = vpop.f32.mrb[3].mxu1  ;;  %v371_v1 = vpop.f32.mrb[7].mxu0  ;;  %v3422_v51 = vld [vmem:[#allocation8 + $0xc8] ss:$16 sps:$4 sm:$0xff]  }
 0x29b   :  { %v456_v2 = vmax.f32 %v328_v57, 0.0  ;;  %v458_v3 = vmax.f32 %v369_v58, 0.0  ;;  %v3427_v52 = vld [vmem:[#allocation8 + $0x4e4] ss:$16 sps:$4 sm:$0xff]   ;;  %v3430_v53 = vld [vmem:[#allocation8 + $0xec] ss:$16 sps:$4 sm:$0xff]  }
 0x29c   :  { %v4065_v9 = vpack.c.bf16 %v455_v62, %v455_v62  ;;  %v4067_v10 = vpack.c.bf16 %v457_v63, %v457_v63  ;;  %v3425_v54 = vld [vmem:[#allocation8 + $0x4e0] ss:$16 sps:$4 sm:$0xff]   ;;  %v3428_v55 = vld [vmem:[#allocation8 + $0xe8] ss:$16 sps:$4 sm:$0xff]   ;;  %v3433_v56 = vld [vmem:[#allocation8 + $0x504] ss:$16 sps:$4 sm:$0xff]  }
 0x29d   :  { %v464_v4 = vpack.c.bf16 %v456_v2, %v456_v2  ;;  %v4062_v5 = vpack.c.bf16 %v458_v3, %v458_v3  ;;  %v3436_v57 = vld [vmem:[#allocation8 + $0x10c] ss:$16 sps:$4 sm:$0xff]   ;;  %v3431_v58 = vld [vmem:[#allocation8 + $0x500] ss:$16 sps:$4 sm:$0xff]   ;;  %v3434_v59 = vld [vmem:[#allocation8 + $0x108] ss:$16 sps:$4 sm:$0xff]  }
 0x29e   :  { %v3439_v60 = vld [vmem:[#allocation8 + $0x524] ss:$16 sps:$4 sm:$0xff]   ;;  %v3437_v62 = vld [vmem:[#allocation8 + $0x520] ss:$16 sps:$4 sm:$0xff]   ;;  %v3440_v63 = vld [vmem:[#allocation8 + $0x128] ss:$16 sps:$4 sm:$0xff]  }
 0x29f   :  { %v4069_v12 = vpop.f32.mrb[4].mxu1  ;;  %v4071_v13 = vpop.f32.mrb[8].mxu0  ;;  %2061 = vmatprep.mubr.bf16.mxu0 %v464_v4  ;;  %2102 = vmatprep.mubr.bf16.mxu1 %v4062_v5  ;;  %v3445_v0 = vld [vmem:[#allocation8 + $0x544] ss:$16 sps:$4 sm:$0xff]   ;;  %v3448_v1 = vld [vmem:[#allocation8 + $0x14c] ss:$16 sps:$4 sm:$0xff]  }
 0x2a0   :  { %v409_v15 = vpop.f32.mrb[5].mxu1  ;;  %v4074_v16 = vpop.f32.mrb[9].mxu0  ;;  %2062 = vmatmul.mubr.bf16.vlgmr.msra.gmra.mrb[12].mxu0 %v4065_v9  ;;  %2103 = vmatmul.mubr.bf16.vlgmr.msra.gmra.mrb[8].mxu1 %v4067_v10  ;;  %v3443_v2 = vld [vmem:[#allocation8 + $0x540] ss:$16 sps:$4 sm:$0xff]   ;;  %v3446_v3 = vld [vmem:[#allocation8 + $0x148] ss:$16 sps:$4 sm:$0xff]  }
 0x2a1   :  { %v410_v17 = vadd.f32 %v409_v15, %v230_v8  ;;  %2112 = vmatpush1.bf16.msra.mxu1 %v3383_v6  ;;  %2194 = vmatpush1.bf16.msra.mxu0 %v3386_v7  ;;  %v411_v18 = vpop.f32.mrb[6].mxu1  ;;  %v452_v19 = vpop.f32.mrb[10].mxu0  ;;  %v3454_v6 = vld [vmem:[#allocation8 + $0x16c] ss:$16 sps:$4 sm:$0xff]   ;;  %v3449_v7 = vld [vmem:[#allocation8 + $0x560] ss:$16 sps:$4 sm:$0xff]  }
 0x2a2   :  { %2225 = vmatprep.mubr.bf16.mxu0 %v464_v4  ;;  %v412_v22 = vpop.f32.mrb[7].mxu1  ;;  %v453_v23 = vpop.f32.mrb[11].mxu0  ;;  %2113 = vmatprep.subr.bf16.mxu1 %v3391_v11  ;;  %v3451_v4 = vld [vmem:[#allocation8 + $0x564] ss:$16 sps:$4 sm:$0xff]   ;;  %v3452_v8 = vld [vmem:[#allocation8 + $0x168] ss:$16 sps:$4 sm:$0xff]  }
 0x2a3   :  { %v460_v26 = vmax.f32 %v410_v17, 0.0  ;;  %2195 = vmatprep.subr.bf16.mxu0 %v3394_v14  ;;  %v3457_v11 = vld [vmem:[#allocation8 + $0x584] ss:$16 sps:$4 sm:$0xff]   ;;  %v3460_v14 = vld [vmem:[#allocation8 + $0x18c] ss:$16 sps:$4 sm:$0xff]   ;;  %v225_v18 = vsub.s32 4, %v4036_v41 }
 0x2a4   :  { %v3455_v15 = vld [vmem:[#allocation8 + $0x580] ss:$16 sps:$4 sm:$0xff]   ;;  %v3458_v17 = vld [vmem:[#allocation8 + $0x188] ss:$16 sps:$4 sm:$0xff]   ;;  %v3463_v19 = vld [vmem:[#allocation8 + $0x5a4] ss:$16 sps:$4 sm:$0xff]  }
 0x2a5   :  { %v4078_v27 = vpack.c.bf16 %v460_v26, %v460_v26  ;;  %2114 = vmatpush1.bf16.msra.mxu1 %v3389_v20  ;;  %2196 = vmatpush1.bf16.msra.mxu0 %v3392_v21  ;;  %v3466_v20 = vld [vmem:[#allocation8 + $0x1ac] ss:$16 sps:$4 sm:$0xff]   ;;  %v237_v21 = vsub.s32 7, %v4036_v41  ;;  %v3461_v22 = vld [vmem:[#allocation8 + $0x5a0] ss:$16 sps:$4 sm:$0xff]  }
 0x2a6   :  { %2115 = vmatprep.subr.bf16.mxu1 %v3397_v24  ;;  %2197 = vmatprep.subr.bf16.mxu0 %v3400_v25  ;;  %v3464_v23 = vld [vmem:[#allocation8 + $0x1a8] ss:$16 sps:$4 sm:$0xff]   ;;  %v226_v24 = vrot.slane %v4045_v44, %v225_v18  ;;  %v3469_v25 = vld [vmem:[#allocation8 + $0x5c4] ss:$16 sps:$4 sm:$0xff]   ;;  %v3472_v26 = vld [vmem:[#allocation8 + $0x1cc] ss:$16 sps:$4 sm:$0xff]  }
 0x2a7   :  { %2143 = vmatprep.mubr.bf16.mxu1 %v4078_v27  ;;  %v3532_v18 = vld [vmem:[#allocation8 + $0x30c] ss:$16 sps:$4 sm:$0xff]  }
 0x2a9   :  { %2116 = vmatpush1.bf16.msra.mxu1 %v3395_v28  ;;  %2198 = vmatpush1.bf16.msra.mxu0 %v3398_v29  ;;  %v238_v28 = vrot.slane %v4045_v44, %v237_v21  ;;  %v3467_v29 = vld [vmem:[#allocation8 + $0x5c0] ss:$16 sps:$4 sm:$0xff]   ;;  %v3535_v21 = vld [vmem:[#allocation8 + $0x724] ss:$16 sps:$4 sm:$0xff]  }
 0x2aa   :  { %2117 = vmatprep.subr.bf16.mxu1 %v3403_v30  ;;  %2199 = vmatprep.subr.bf16.mxu0 %v3406_v31  ;;  %v3470_v30 = vld [vmem:[#allocation8 + $0x1c8] ss:$16 sps:$4 sm:$0xff]   ;;  %v408_v31 = vadd.f32 %v4069_v12, %v226_v24 }
 0x2ab   :  { %v3536_v24 = vld [vmem:[#allocation8 + $0x328] ss:$16 sps:$4 sm:$0xff]  }
 0x2ad   :  { %2118 = vmatpush1.bf16.msra.mxu1 %v3401_v32  ;;  %2200 = vmatpush1.bf16.msra.mxu0 %v3404_v33  ;;  %v3475_v32 = vld [vmem:[#allocation8 + $0x5e4] ss:$16 sps:$4 sm:$0xff]   ;;  %v3478_v33 = vld [vmem:[#allocation8 + $0x1ec] ss:$16 sps:$4 sm:$0xff]  }
 0x2ae   :  { %2119 = vmatprep.subr.bf16.mxu1 %v3409_v34  ;;  %2201 = vmatprep.subr.bf16.mxu0 %v3412_v35  ;;  %v451_v34 = vadd.f32 %v4074_v16, %v238_v28  ;;  %v3473_v35 = vld [vmem:[#allocation8 + $0x5e0] ss:$16 sps:$4 sm:$0xff]   ;;  %v3487_v16 = vld [vmem:[#allocation8 + $0x624] ss:$16 sps:$4 sm:$0xff]  }
 0x2af   :  { %v3539_v28 = vld [vmem:[#allocation8 + $0x740] ss:$16 sps:$4 sm:$0xff]  }
 0x2b1   :  { %2120 = vmatpush1.bf16.msra.mxu1 %v3407_v36  ;;  %2202 = vmatpush1.bf16.msra.mxu0 %v3410_v37  ;;  %v3476_v36 = vld [vmem:[#allocation8 + $0x1e8] ss:$16 sps:$4 sm:$0xff]   ;;  %v459_v37 = vmax.f32 %v408_v31, 0.0  ;;  %v3550_v31 = vld [vmem:[#allocation8 + $0x36c] ss:$16 sps:$4 sm:$0xff]  }
 0x2b2   :  { %2121 = vmatprep.subr.bf16.mxu1 %v3415_v38  ;;  %2203 = vmatprep.subr.bf16.mxu0 %v3418_v39  ;;  %v3481_v38 = vld [vmem:[#allocation8 + $0x604] ss:$16 sps:$4 sm:$0xff]   ;;  %v3484_v39 = vld [vmem:[#allocation8 + $0x20c] ss:$16 sps:$4 sm:$0xff]  }
 0x2b3   :  { %v4087_v12 = vpack.c.bf16 %v459_v37, %v459_v37  ;;  %v233_v37 = vsub.s32 6, %v4036_v41 }
 0x2b5   :  { %2122 = vmatpush1.bf16.msra.mxu1 %v3413_v40  ;;  %2204 = vmatpush1.bf16.msra.mxu0 %v3416_v47  ;;  %v462_v40 = vmax.f32 %v451_v34, 0.0  ;;  %v3479_v47 = vld [vmem:[#allocation8 + $0x600] ss:$16 sps:$4 sm:$0xff]   ;;  %v3553_v34 = vld [vmem:[#allocation8 + $0x784] ss:$16 sps:$4 sm:$0xff]  }
 0x2b6   :  { %2123 = vmatprep.subr.bf16.mxu1 %v3421_v48  ;;  %2205 = vmatprep.subr.bf16.mxu0 %v3424_v49  ;;  %v3482_v48 = vld [vmem:[#allocation8 + $0x208] ss:$16 sps:$4 sm:$0xff]  }
 0x2b7   :  { %v4089_v49 = vpack.c.bf16 %v462_v40, %v462_v40  ;;  %v3562_v40 = vld [vmem:[#allocation8 + $0x3ac] ss:$16 sps:$4 sm:$0xff]  }
 0x2b9   :  { %2124 = vmatpush1.bf16.msra.mxu1 %v3419_v50  ;;  %2206 = vmatpush1.bf16.msra.mxu0 %v3422_v51  ;;  %v3490_v50 = vld [vmem:[#allocation8 + $0x22c] ss:$16 sps:$4 sm:$0xff]   ;;  %v3485_v51 = vld [vmem:[#allocation8 + $0x620] ss:$16 sps:$4 sm:$0xff]  }
 0x2ba   :  { %2125 = vmatprep.subr.bf16.mxu1 %v3427_v52  ;;  %2207 = vmatprep.subr.bf16.mxu0 %v3430_v53  ;;  %v3488_v52 = vld [vmem:[#allocation8 + $0x228] ss:$16 sps:$4 sm:$0xff]   ;;  %v3493_v53 = vld [vmem:[#allocation8 + $0x644] ss:$16 sps:$4 sm:$0xff]  }
 0x2bd   :  { %2126 = vmatpush1.bf16.msra.mxu1 %v3425_v54  ;;  %2208 = vmatpush1.bf16.msra.mxu0 %v3428_v55  ;;  %v3496_v54 = vld [vmem:[#allocation8 + $0x24c] ss:$16 sps:$4 sm:$0xff]   ;;  %v3491_v55 = vld [vmem:[#allocation8 + $0x640] ss:$16 sps:$4 sm:$0xff]  }
 0x2be   :  { %2127 = vmatprep.subr.bf16.mxu1 %v3433_v56  ;;  %2209 = vmatprep.subr.bf16.mxu0 %v3436_v57  ;;  %v3494_v56 = vld [vmem:[#allocation8 + $0x248] ss:$16 sps:$4 sm:$0xff]   ;;  %v3499_v57 = vld [vmem:[#allocation8 + $0x664] ss:$16 sps:$4 sm:$0xff]  }
 0x2c1   :  { %2128 = vmatpush1.bf16.msra.mxu1 %v3431_v58  ;;  %2210 = vmatpush1.bf16.msra.mxu0 %v3434_v59  ;;  %v3497_v58 = vld [vmem:[#allocation8 + $0x660] ss:$16 sps:$4 sm:$0xff]   ;;  %v3500_v59 = vld [vmem:[#allocation8 + $0x268] ss:$16 sps:$4 sm:$0xff]  }
 0x2c2   :  { %2129 = vmatprep.subr.bf16.mxu1 %v3439_v60  ;;  %2211 = vmatprep.subr.bf16.mxu0 %v3442_v61  ;;  %v3505_v60 = vld [vmem:[#allocation8 + $0x684] ss:$16 sps:$4 sm:$0xff]   ;;  %v3503_v61 = vld [vmem:[#allocation8 + $0x680] ss:$16 sps:$4 sm:$0xff]  }
 0x2c5   :  { %2130 = vmatpush1.bf16.msra.mxu1 %v3437_v62  ;;  %2212 = vmatpush1.bf16.msra.mxu0 %v3440_v63  ;;  %v3506_v62 = vld [vmem:[#allocation8 + $0x288] ss:$16 sps:$4 sm:$0xff]   ;;  %v3511_v63 = vld [vmem:[#allocation8 + $0x6a4] ss:$16 sps:$4 sm:$0xff]  }
 0x2c6   :  { %2131 = vmatprep.subr.bf16.mxu1 %v3445_v0  ;;  %2213 = vmatprep.subr.bf16.mxu0 %v3448_v1  ;;  %v3514_v0 = vld [vmem:[#allocation8 + $0x2ac] ss:$16 sps:$4 sm:$0xff]   ;;  %v3509_v1 = vld [vmem:[#allocation8 + $0x6a0] ss:$16 sps:$4 sm:$0xff]  }
 0x2c9   :  { %2132 = vmatpush1.bf16.msra.mxu1 %v3443_v2  ;;  %2214 = vmatpush1.bf16.msra.mxu0 %v3446_v3  ;;  %v3512_v2 = vld [vmem:[#allocation8 + $0x2a8] ss:$16 sps:$4 sm:$0xff]   ;;  %v3517_v3 = vld [vmem:[#allocation8 + $0x6c4] ss:$16 sps:$4 sm:$0xff]  }
 0x2ca   :  { %2133 = vmatprep.subr.bf16.mxu1 %v3451_v4  ;;  %2215 = vmatprep.subr.bf16.mxu0 %v3454_v6  ;;  %v3520_v4 = vld [vmem:[#allocation8 + $0x2cc] ss:$16 sps:$4 sm:$0xff]   ;;  %v3515_v6 = vld [vmem:[#allocation8 + $0x6c0] ss:$16 sps:$4 sm:$0xff]  }
 0x2cd   :  { %2134 = vmatpush1.bf16.msra.mxu1 %v3449_v7  ;;  %2216 = vmatpush1.bf16.msra.mxu0 %v3452_v8  ;;  %v3518_v7 = vld [vmem:[#allocation8 + $0x2c8] ss:$16 sps:$4 sm:$0xff]   ;;  %v3523_v8 = vld [vmem:[#allocation8 + $0x6e4] ss:$16 sps:$4 sm:$0xff]  }
 0x2ce   :  { %2135 = vmatprep.subr.bf16.mxu1 %v3457_v11  ;;  %2217 = vmatprep.subr.bf16.mxu0 %v3460_v14  ;;  %v3526_v11 = vld [vmem:[#allocation8 + $0x2ec] ss:$16 sps:$4 sm:$0xff]   ;;  %v3521_v14 = vld [vmem:[#allocation8 + $0x6e0] ss:$16 sps:$4 sm:$0xff]  }
 0x2d1   :  { %2136 = vmatpush1.bf16.msra.mxu1 %v3455_v15  ;;  %2218 = vmatpush1.bf16.msra.mxu0 %v3458_v17  ;;  %v3524_v15 = vld [vmem:[#allocation8 + $0x2e8] ss:$16 sps:$4 sm:$0xff]   ;;  %v3529_v17 = vld [vmem:[#allocation8 + $0x704] ss:$16 sps:$4 sm:$0xff]  }
 0x2d2   :  { %2137 = vmatprep.subr.bf16.mxu1 %v3463_v19  ;;  %2219 = vmatprep.subr.bf16.mxu0 %v3466_v20  ;;  %v3527_v19 = vld [vmem:[#allocation8 + $0x700] ss:$16 sps:$4 sm:$0xff]   ;;  %v3530_v20 = vld [vmem:[#allocation8 + $0x308] ss:$16 sps:$4 sm:$0xff]  }
 0x2d5   :  { %2138 = vmatpush1.bf16.msra.mxu1 %v3461_v22  ;;  %2220 = vmatpush1.bf16.msra.mxu0 %v3464_v23  ;;  %v3538_v22 = vld [vmem:[#allocation8 + $0x32c] ss:$16 sps:$4 sm:$0xff]   ;;  %v3533_v23 = vld [vmem:[#allocation8 + $0x720] ss:$16 sps:$4 sm:$0xff]  }
 0x2d6   :  { %2139 = vmatprep.subr.bf16.mxu1 %v3469_v25  ;;  %2221 = vmatprep.subr.bf16.mxu0 %v3472_v26  ;;  %v3541_v25 = vld [vmem:[#allocation8 + $0x744] ss:$16 sps:$4 sm:$0xff]   ;;  %v3544_v26 = vld [vmem:[#allocation8 + $0x34c] ss:$16 sps:$4 sm:$0xff]  }
 0x2d9   :  { %2140 = vmatpush1.bf16.msra.mxu1 %v3467_v29  ;;  %2222 = vmatpush1.bf16.msra.mxu0 %v3470_v30  ;;  %v3542_v29 = vld [vmem:[#allocation8 + $0x348] ss:$16 sps:$4 sm:$0xff]   ;;  %v3547_v30 = vld [vmem:[#allocation8 + $0x764] ss:$16 sps:$4 sm:$0xff]  }
 0x2da   :  { %2141 = vmatprep.subr.bf16.mxu1 %v3475_v32  ;;  %2223 = vmatprep.subr.bf16.mxu0 %v3478_v33  ;;  %v3545_v32 = vld [vmem:[#allocation8 + $0x760] ss:$16 sps:$4 sm:$0xff]   ;;  %v3548_v33 = vld [vmem:[#allocation8 + $0x368] ss:$16 sps:$4 sm:$0xff]  }
 0x2dd   :  { %2142 = vmatpush1.bf16.msra.mxu1 %v3473_v35  ;;  %2224 = vmatpush1.bf16.msra.mxu0 %v3476_v36  ;;  %v3556_v35 = vld [vmem:[#allocation8 + $0x38c] ss:$16 sps:$4 sm:$0xff]   ;;  %v3551_v36 = vld [vmem:[#allocation8 + $0x780] ss:$16 sps:$4 sm:$0xff]  }
 0x2de   :  { %2152 = vmatprep.subr.bf16.mxu1 %v3481_v38  ;;  %2234 = vmatprep.subr.bf16.mxu0 %v3484_v39  ;;  %v3554_v38 = vld [vmem:[#allocation8 + $0x388] ss:$16 sps:$4 sm:$0xff]   ;;  %v3559_v39 = vld [vmem:[#allocation8 + $0x7a4] ss:$16 sps:$4 sm:$0xff]  }
 0x2e0   :  { %2144 = vmatmul.mubr.bf16.vlgmr.msra.gmra.mrb[8].mxu1 %v4087_v12  ;;  %2226 = vmatmul.mubr.bf16.vlgmr.msra.gmra.mrb[16].mxu0 %v4065_v9  ;;  %v3502_v9 = vld [vmem:[#allocation8 + $0x26c] ss:$16 sps:$4 sm:$0xff]  }
 0x2e1   :  { %2153 = vmatpush1.bf16.msra.mxu1 %v3479_v47  ;;  %2184 = vmatprep.mubr.bf16.mxu1 %v4089_v49  ;;  %v3557_v47 = vld [vmem:[#allocation8 + $0x7a0] ss:$16 sps:$4 sm:$0xff]  }
 0x2e2   :  { %2235 = vmatpush1.bf16.msra.mxu0 %v3482_v48  ;;  %2266 = vmatprep.mubr.bf16.mxu0 %v4062_v5  ;;  %v3508_v5 = vld [vmem:[#allocation8 + $0x28c] ss:$16 sps:$4 sm:$0xff]   ;;  %v234_v48 = vrot.slane %v4045_v44, %v233_v37  ;;  %v3572_v44 = vld [vmem:[#allocation8 + $0x3e8] ss:$16 sps:$4 sm:$0xff]  }
 0x2e3   :  { %2154 = vmatprep.subr.bf16.mxu1 %v3487_v16  ;;  %2236 = vmatprep.subr.bf16.mxu0 %v3490_v50  ;;  %v3560_v16 = vld [vmem:[#allocation8 + $0x3a8] ss:$16 sps:$4 sm:$0xff]   ;;  %v3565_v50 = vld [vmem:[#allocation8 + $0x7c4] ss:$16 sps:$4 sm:$0xff]   ;;  %v3607_v37 = vld [vmem:[#allocation8 + $0x54c] ss:$16 sps:$4 sm:$0xff]  }
 0x2e5   :  { %2155 = vmatpush1.bf16.msra.mxu1 %v3485_v51  ;;  %v3568_v51 = vld [vmem:[#allocation8 + $0x3cc] ss:$16 sps:$4 sm:$0xff]  }
 0x2e6   :  { %2237 = vmatpush1.bf16.msra.mxu0 %v3488_v52  ;;  %2156 = vmatprep.subr.bf16.mxu1 %v3493_v53  ;;  %v3563_v52 = vld [vmem:[#allocation8 + $0x7c0] ss:$16 sps:$4 sm:$0xff]   ;;  %v449_v53 = vadd.f32 %v4071_v13, %v234_v48  ;;  %v3580_v13 = vld [vmem:[#allocation8 + $0x42c] ss:$16 sps:$4 sm:$0xff]  }
 0x2e7   :  { %2238 = vmatprep.subr.bf16.mxu0 %v3496_v54  ;;  %v3566_v54 = vld [vmem:[#allocation8 + $0x3c8] ss:$16 sps:$4 sm:$0xff]  }
 0x2e8   :  { %v3701_v48 = vld [vmem:[#allocation10 + $0xa0] ss:$8 sps:$4 sm:$0xff]  }
 0x2e9   :  { %2157 = vmatpush1.bf16.msra.mxu1 %v3491_v55  ;;  %v3571_v55 = vld [vmem:[#allocation8 + $0x7e4] ss:$16 sps:$4 sm:$0xff]  }
 0x2ea   :  { %2239 = vmatpush1.bf16.msra.mxu0 %v3494_v56  ;;  %2158 = vmatprep.subr.bf16.mxu1 %v3499_v57  ;;  %v3574_v56 = vld [vmem:[#allocation8 + $0x3ec] ss:$16 sps:$4 sm:$0xff]   ;;  %v3569_v57 = vld [vmem:[#allocation8 + $0x7e0] ss:$16 sps:$4 sm:$0xff]  }
 0x2eb   :  { %2240 = vmatprep.subr.bf16.mxu0 %v3502_v9  ;;  %v461_v9 = vmax.f32 %v449_v53, 0.0  ;;  %v3709_v53 = vld [vmem:[#allocation10 + $0xc4] ss:$8 sps:$4 sm:$0xff]  }
 0x2ed   :  { %2159 = vmatpush1.bf16.msra.mxu1 %v3497_v58  ;;  %v3577_v58 = vld [vmem:[#allocation8 + $0x40c] ss:$16 sps:$4 sm:$0xff]  }
 0x2ee   :  { %2241 = vmatpush1.bf16.msra.mxu0 %v3500_v59  ;;  %2160 = vmatprep.subr.bf16.mxu1 %v3505_v60  ;;  %v4098_v59 = vpack.c.bf16 %v461_v9, %v461_v9  ;;  %v3575_v60 = vld [vmem:[#allocation8 + $0x408] ss:$16 sps:$4 sm:$0xff]  }
 0x2ef   :  { %2242 = vmatprep.subr.bf16.mxu0 %v3508_v5  ;;  %v3671_v5 = vld [vmem:[#allocation10] ss:$8 sps:$4 sm:$0xff]  }
 0x2f0   :  { %v3614_v9 = vld [vmem:[#allocation8 + $0x5a8] ss:$16 sps:$4 sm:$0xff]  }
 0x2f1   :  { %2161 = vmatpush1.bf16.msra.mxu1 %v3503_v61  ;;  %v3673_v61 = vld [vmem:[#allocation10 + $0x4] ss:$8 sps:$4 sm:$0xff]  }
 0x2f2   :  { %2243 = vmatpush1.bf16.msra.mxu0 %v3506_v62  ;;  %2162 = vmatprep.subr.bf16.mxu1 %v3511_v63  ;;  %v3578_v62 = vld [vmem:[#allocation8 + $0x428] ss:$16 sps:$4 sm:$0xff]   ;;  %v3676_v63 = vld [vmem:[#allocation10 + $0x14] ss:$8 sps:$4 sm:$0xff]  }
 0x2f3   :  { %2244 = vmatprep.subr.bf16.mxu0 %v3514_v0  ;;  %v3583_v0 = vld [vmem:[#allocation8 + $0x44c] ss:$16 sps:$4 sm:$0xff]  }
 0x2f5   :  { %2163 = vmatpush1.bf16.msra.mxu1 %v3509_v1  ;;  %v3674_v1 = vld [vmem:[#allocation10 + $0x10] ss:$8 sps:$4 sm:$0xff]  }
 0x2f6   :  { %2245 = vmatpush1.bf16.msra.mxu0 %v3512_v2  ;;  %2164 = vmatprep.subr.bf16.mxu1 %v3517_v3  ;;  %v3679_v2 = vld [vmem:[#allocation10 + $0x24] ss:$8 sps:$4 sm:$0xff]   ;;  %v3581_v3 = vld [vmem:[#allocation8 + $0x448] ss:$16 sps:$4 sm:$0xff]  }
 0x2f7   :  { %2246 = vmatprep.subr.bf16.mxu0 %v3520_v4  ;;  %v3586_v4 = vld [vmem:[#allocation8 + $0x46c] ss:$16 sps:$4 sm:$0xff]  }
 0x2f9   :  { %2165 = vmatpush1.bf16.msra.mxu1 %v3515_v6  ;;  %v3682_v6 = vld [vmem:[#allocation10 + $0x34] ss:$8 sps:$4 sm:$0xff]  }
 0x2fa   :  { %2247 = vmatpush1.bf16.msra.mxu0 %v3518_v7  ;;  %2166 = vmatprep.subr.bf16.mxu1 %v3523_v8  ;;  %v3584_v7 = vld [vmem:[#allocation8 + $0x468] ss:$16 sps:$4 sm:$0xff]  }
 0x2fb   :  { %2248 = vmatprep.subr.bf16.mxu0 %v3526_v11  ;;  %v3680_v8 = vld [vmem:[#allocation10 + $0x30] ss:$8 sps:$4 sm:$0xff]   ;;  %v3685_v11 = vld [vmem:[#allocation10 + $0x44] ss:$8 sps:$4 sm:$0xff]  }
 0x2fd   :  { %2167 = vmatpush1.bf16.msra.mxu1 %v3521_v14  ;;  %v3587_v14 = vld [vmem:[#allocation8 + $0x488] ss:$16 sps:$4 sm:$0xff]  }
 0x2fe   :  { %2249 = vmatpush1.bf16.msra.mxu0 %v3524_v15  ;;  %2168 = vmatprep.subr.bf16.mxu1 %v3529_v17  ;;  %v3592_v15 = vld [vmem:[#allocation8 + $0x4ac] ss:$16 sps:$4 sm:$0xff]   ;;  %v3683_v17 = vld [vmem:[#allocation10 + $0x40] ss:$8 sps:$4 sm:$0xff]  }
 0x2ff   :  { %2250 = vmatprep.subr.bf16.mxu0 %v3532_v18  ;;  %v3688_v18 = vld [vmem:[#allocation10 + $0x54] ss:$8 sps:$4 sm:$0xff]  }
 0x301   :  { %2169 = vmatpush1.bf16.msra.mxu1 %v3527_v19  ;;  %v3590_v19 = vld [vmem:[#allocation8 + $0x4a8] ss:$16 sps:$4 sm:$0xff]  }
 0x302   :  { %2251 = vmatpush1.bf16.msra.mxu0 %v3530_v20  ;;  %2170 = vmatprep.subr.bf16.mxu1 %v3535_v21  ;;  %v3595_v20 = vld [vmem:[#allocation8 + $0x4cc] ss:$16 sps:$4 sm:$0xff]   ;;  %v3686_v21 = vld [vmem:[#allocation10 + $0x50] ss:$8 sps:$4 sm:$0xff]  }
 0x303   :  { %2252 = vmatprep.subr.bf16.mxu0 %v3538_v22  ;;  %v3691_v22 = vld [vmem:[#allocation10 + $0x64] ss:$8 sps:$4 sm:$0xff]  }
 0x305   :  { %2171 = vmatpush1.bf16.msra.mxu1 %v3533_v23  ;;  %v3593_v23 = vld [vmem:[#allocation8 + $0x4c8] ss:$16 sps:$4 sm:$0xff]  }
 0x306   :  { %2253 = vmatpush1.bf16.msra.mxu0 %v3536_v24  ;;  %2172 = vmatprep.subr.bf16.mxu1 %v3541_v25  ;;  %v3598_v24 = vld [vmem:[#allocation8 + $0x4ec] ss:$16 sps:$4 sm:$0xff]   ;;  %v3689_v25 = vld [vmem:[#allocation10 + $0x60] ss:$8 sps:$4 sm:$0xff]  }
 0x307   :  { %2254 = vmatprep.subr.bf16.mxu0 %v3544_v26  ;;  %v3694_v26 = vld [vmem:[#allocation10 + $0x74] ss:$8 sps:$4 sm:$0xff]  }
 0x309   :  { %2173 = vmatpush1.bf16.msra.mxu1 %v3539_v28  ;;  %v3596_v28 = vld [vmem:[#allocation8 + $0x4e8] ss:$16 sps:$4 sm:$0xff]  }
 0x30a   :  { %2255 = vmatpush1.bf16.msra.mxu0 %v3542_v29  ;;  %2174 = vmatprep.subr.bf16.mxu1 %v3547_v30  ;;  %v3601_v29 = vld [vmem:[#allocation8 + $0x50c] ss:$16 sps:$4 sm:$0xff]   ;;  %v3692_v30 = vld [vmem:[#allocation10 + $0x70] ss:$8 sps:$4 sm:$0xff]  }
 0x30b   :  { %2256 = vmatprep.subr.bf16.mxu0 %v3550_v31  ;;  %v3697_v31 = vld [vmem:[#allocation10 + $0x84] ss:$8 sps:$4 sm:$0xff]  }
 0x30d   :  { %2175 = vmatpush1.bf16.msra.mxu1 %v3545_v32  ;;  %v3599_v32 = vld [vmem:[#allocation8 + $0x508] ss:$16 sps:$4 sm:$0xff]  }
 0x30e   :  { %2257 = vmatpush1.bf16.msra.mxu0 %v3548_v33  ;;  %2176 = vmatprep.subr.bf16.mxu1 %v3553_v34  ;;  %v3604_v33 = vld [vmem:[#allocation8 + $0x52c] ss:$16 sps:$4 sm:$0xff]   ;;  %v3695_v34 = vld [vmem:[#allocation10 + $0x80] ss:$8 sps:$4 sm:$0xff]  }
 0x30f   :  { %2258 = vmatprep.subr.bf16.mxu0 %v3556_v35  ;;  %v3700_v35 = vld [vmem:[#allocation10 + $0x94] ss:$8 sps:$4 sm:$0xff]  }
 0x311   :  { %2177 = vmatpush1.bf16.msra.mxu1 %v3551_v36  ;;  %v3602_v36 = vld [vmem:[#allocation8 + $0x528] ss:$16 sps:$4 sm:$0xff]  }
 0x312   :  { %2259 = vmatpush1.bf16.msra.mxu0 %v3554_v38  ;;  %2178 = vmatprep.subr.bf16.mxu1 %v3559_v39  ;;  %v3698_v38 = vld [vmem:[#allocation10 + $0x90] ss:$8 sps:$4 sm:$0xff]   ;;  %v3703_v39 = vld [vmem:[#allocation10 + $0xa4] ss:$8 sps:$4 sm:$0xff]  }
 0x313   :  { %2260 = vmatprep.subr.bf16.mxu0 %v3562_v40  ;;  %v3605_v40 = vld [vmem:[#allocation8 + $0x548] ss:$16 sps:$4 sm:$0xff]  }
 0x315   :  { %2179 = vmatpush1.bf16.msra.mxu1 %v3557_v47  ;;  %v3610_v47 = vld [vmem:[#allocation8 + $0x56c] ss:$16 sps:$4 sm:$0xff]  }
 0x316   :  { %2261 = vmatpush1.bf16.msra.mxu0 %v3560_v16  ;;  %2180 = vmatprep.subr.bf16.mxu1 %v3565_v50  ;;  %v3706_v16 = vld [vmem:[#allocation10 + $0xb4] ss:$8 sps:$4 sm:$0xff]   ;;  %v3608_v50 = vld [vmem:[#allocation8 + $0x568] ss:$16 sps:$4 sm:$0xff]  }
 0x317   :  { %2262 = vmatprep.subr.bf16.mxu0 %v3568_v51  ;;  %v3613_v51 = vld [vmem:[#allocation8 + $0x58c] ss:$16 sps:$4 sm:$0xff]  }
 0x319   :  { %2181 = vmatpush1.bf16.msra.mxu1 %v3563_v52  ;;  %v3704_v52 = vld [vmem:[#allocation10 + $0xb0] ss:$8 sps:$4 sm:$0xff]  }
 0x31a   :  { %2263 = vmatpush1.bf16.msra.mxu0 %v3566_v54  ;;  %2182 = vmatprep.subr.bf16.mxu1 %v3571_v55  ;;  %v3611_v54 = vld [vmem:[#allocation8 + $0x588] ss:$16 sps:$4 sm:$0xff]   ;;  %v3616_v55 = vld [vmem:[#allocation8 + $0x5ac] ss:$16 sps:$4 sm:$0xff]  }
 0x31b   :  { %2264 = vmatprep.subr.bf16.mxu0 %v3574_v56  ;;  %v3707_v56 = vld [vmem:[#allocation10 + $0xc0] ss:$8 sps:$4 sm:$0xff]  }
 0x31d   :  { %2183 = vmatpush1.bf16.msra.mxu1 %v3569_v57  ;;  %v3712_v57 = vld [vmem:[#allocation10 + $0xd4] ss:$8 sps:$4 sm:$0xff]  }
 0x31e   :  { %2265 = vmatpush1.bf16.msra.mxu0 %v3572_v44  ;;  %2761 = vmatprep.subr.bf16.mxu1 %v3673_v61  ;;  %v3619_v44 = vld [vmem:[#allocation8 + $0x5cc] ss:$16 sps:$4 sm:$0xff]  }
 0x31f   :  { %2275 = vmatprep.subr.bf16.mxu0 %v3577_v58  ;;  %v3710_v58 = vld [vmem:[#allocation10 + $0xd0] ss:$8 sps:$4 sm:$0xff]   ;;  %v3625_v61 = vld [vmem:[#allocation8 + $0x60c] ss:$16 sps:$4 sm:$0xff]  }
 0x320   :  { %2185 = vmatmul.mubr.bf16.vlgmr.msra.gmra.mrb[8].mxu1 %v4098_v59 }
 0x321   :  { %2267 = vmatmul.mubr.bf16.vlgmr.msra.gmra.mrb[16].mxu0 %v4067_v10  ;;  %2762 = vmatpush1.bf16.msra.mxu1 %v3671_v5  ;;  %v3677_v10 = vld [vmem:[#allocation10 + $0x20] ss:$8 sps:$4 sm:$0xff]  }
 0x322   :  { %2276 = vmatpush1.bf16.msra.mxu0 %v3575_v60  ;;  %2307 = vmatprep.mubr.bf16.mxu0 %v4078_v27  ;;  %v3589_v27 = vld [vmem:[#allocation8 + $0x48c] ss:$16 sps:$4 sm:$0xff]   ;;  %v3617_v60 = vld [vmem:[#allocation8 + $0x5c8] ss:$16 sps:$4 sm:$0xff]  }
 0x323   :  { %2277 = vmatprep.subr.bf16.mxu0 %v3580_v13  ;;  %2763 = vmatprep.subr.bf16.mxu1 %v3676_v63  ;;  %v3622_v13 = vld [vmem:[#allocation8 + $0x5ec] ss:$16 sps:$4 sm:$0xff]   ;;  %v3620_v5 = vld [vmem:[#allocation8 + $0x5e8] ss:$16 sps:$4 sm:$0xff]  }
 0x324   :  { %v3628_v63 = vld [vmem:[#allocation8 + $0x62c] ss:$16 sps:$4 sm:$0xff]  }
 0x325   :  { %2764 = vmatpush1.bf16.msra.mxu1 %v3674_v1  ;;  %v3631_v1 = vld [vmem:[#allocation8 + $0x64c] ss:$16 sps:$4 sm:$0xff]  }
 0x326   :  { %2278 = vmatpush1.bf16.msra.mxu0 %v3578_v62  ;;  %2765 = vmatprep.subr.bf16.mxu1 %v3679_v2  ;;  %v3623_v62 = vld [vmem:[#allocation8 + $0x608] ss:$16 sps:$4 sm:$0xff]  }
 0x327   :  { %2279 = vmatprep.subr.bf16.mxu0 %v3583_v0  ;;  %v3626_v0 = vld [vmem:[#allocation8 + $0x628] ss:$16 sps:$4 sm:$0xff]  }
 0x328   :  { %v3629_v2 = vld [vmem:[#allocation8 + $0x648] ss:$16 sps:$4 sm:$0xff]  }
 0x329   :  { %2766 = vmatpush1.bf16.msra.mxu1 %v3677_v10  ;;  %v3637_v10 = vld [vmem:[#allocation8 + $0x68c] ss:$16 sps:$4 sm:$0xff]  }
 0x32a   :  { %2280 = vmatpush1.bf16.msra.mxu0 %v3581_v3  ;;  %2767 = vmatprep.subr.bf16.mxu1 %v3682_v6  ;;  %v3634_v3 = vld [vmem:[#allocation8 + $0x66c] ss:$16 sps:$4 sm:$0xff]   ;;  %v3635_v6 = vld [vmem:[#allocation8 + $0x688] ss:$16 sps:$4 sm:$0xff]  }
 0x32b   :  { %2281 = vmatprep.subr.bf16.mxu0 %v3586_v4  ;;  %v3632_v4 = vld [vmem:[#allocation8 + $0x668] ss:$16 sps:$4 sm:$0xff]  }
 0x32d   :  { %2768 = vmatpush1.bf16.msra.mxu1 %v3680_v8  ;;  %v3715_v8 = vld [vmem:[#allocation10 + $0xe4] ss:$8 sps:$4 sm:$0xff]  }
 0x32e   :  { %2282 = vmatpush1.bf16.msra.mxu0 %v3584_v7  ;;  %2769 = vmatprep.subr.bf16.mxu1 %v3685_v11  ;;  %v3640_v7 = vld [vmem:[#allocation8 + $0x6ac] ss:$16 sps:$4 sm:$0xff]  }
 0x32f   :  { %2283 = vmatprep.subr.bf16.mxu0 %v3589_v27 }
 0x331   :  { %2770 = vmatpush1.bf16.msra.mxu1 %v3683_v17 }
 0x332   :  { %2284 = vmatpush1.bf16.msra.mxu0 %v3587_v14  ;;  %2771 = vmatprep.subr.bf16.mxu1 %v3688_v18  ;;  %v3713_v14 = vld [vmem:[#allocation10 + $0xe0] ss:$8 sps:$4 sm:$0xff]  }
 0x333   :  { %2285 = vmatprep.subr.bf16.mxu0 %v3592_v15  ;;  %v3641_v18 = vld [vmem:[#allocation8 + $0x6c8] ss:$16 sps:$4 sm:$0xff]  }
 0x335   :  { %2772 = vmatpush1.bf16.msra.mxu1 %v3686_v21  ;;  %v3716_v21 = vld [vmem:[#allocation10 + $0xf0] ss:$8 sps:$4 sm:$0xff]  }
 0x336   :  { %2286 = vmatpush1.bf16.msra.mxu0 %v3590_v19  ;;  %2773 = vmatprep.subr.bf16.mxu1 %v3691_v22  ;;  %v3646_v19 = vld [vmem:[#allocation8 + $0x6ec] ss:$16 sps:$4 sm:$0xff]   ;;  %v3644_v22 = vld [vmem:[#allocation8 + $0x6e8] ss:$16 sps:$4 sm:$0xff]  }
 0x337   :  { %2287 = vmatprep.subr.bf16.mxu0 %v3595_v20  ;;  %v3718_v20 = vld [vmem:[#allocation10 + $0xf4] ss:$8 sps:$4 sm:$0xff]  }
 0x339   :  { %2774 = vmatpush1.bf16.msra.mxu1 %v3689_v25  ;;  %v3647_v25 = vld [vmem:[#allocation8 + $0x708] ss:$16 sps:$4 sm:$0xff]  }
 0x33a   :  { %2288 = vmatpush1.bf16.msra.mxu0 %v3593_v23  ;;  %2775 = vmatprep.subr.bf16.mxu1 %v3694_v26  ;;  %v3649_v23 = vld [vmem:[#allocation8 + $0x70c] ss:$16 sps:$4 sm:$0xff]  }
 0x33b   :  { %2289 = vmatprep.subr.bf16.mxu0 %v3598_v24  ;;  %v3721_v24 = vld [vmem:[#allocation10 + $0x104] ss:$8 sps:$4 sm:$0xff]  }
 0x33c   :  { %v3652_v26 = vld [vmem:[#allocation8 + $0x72c] ss:$16 sps:$4 sm:$0xff]  }
 0x33d   :  { %2776 = vmatpush1.bf16.msra.mxu1 %v3692_v30  ;;  %v3653_v30 = vld [vmem:[#allocation8 + $0x748] ss:$16 sps:$4 sm:$0xff]  }
 0x33e   :  { %2290 = vmatpush1.bf16.msra.mxu0 %v3596_v28  ;;  %2777 = vmatprep.subr.bf16.mxu1 %v3697_v31  ;;  %v3650_v28 = vld [vmem:[#allocation8 + $0x728] ss:$16 sps:$4 sm:$0xff]   ;;  %v3658_v31 = vld [vmem:[#allocation8 + $0x76c] ss:$16 sps:$4 sm:$0xff]  }
 0x33f   :  { %2291 = vmatprep.subr.bf16.mxu0 %v3601_v29  ;;  %v3655_v29 = vld [vmem:[#allocation8 + $0x74c] ss:$16 sps:$4 sm:$0xff]  }
 0x341   :  { %2778 = vmatpush1.bf16.msra.mxu1 %v3695_v34  ;;  %v3659_v34 = vld [vmem:[#allocation8 + $0x788] ss:$16 sps:$4 sm:$0xff]  }
 0x342   :  { %2292 = vmatpush1.bf16.msra.mxu0 %v3599_v32  ;;  %2779 = vmatprep.subr.bf16.mxu1 %v3700_v35  ;;  %v3656_v32 = vld [vmem:[#allocation8 + $0x768] ss:$16 sps:$4 sm:$0xff]   ;;  %v3664_v35 = vld [vmem:[#allocation8 + $0x7ac] ss:$16 sps:$4 sm:$0xff]  }
 0x343   :  { %2293 = vmatprep.subr.bf16.mxu0 %v3604_v33  ;;  %v3661_v33 = vld [vmem:[#allocation8 + $0x78c] ss:$16 sps:$4 sm:$0xff]  }
 0x345   :  { %2780 = vmatpush1.bf16.msra.mxu1 %v3698_v38  ;;  %v3665_v38 = vld [vmem:[#allocation8 + $0x7c8] ss:$16 sps:$4 sm:$0xff]  }
 0x346   :  { %2294 = vmatpush1.bf16.msra.mxu0 %v3602_v36  ;;  %2781 = vmatprep.subr.bf16.mxu1 %v3703_v39  ;;  %v3662_v36 = vld [vmem:[#allocation8 + $0x7a8] ss:$16 sps:$4 sm:$0xff]   ;;  %v3670_v39 = vld [vmem:[#allocation8 + $0x7ec] ss:$16 sps:$4 sm:$0xff]  }
 0x347   :  { %2295 = vmatprep.subr.bf16.mxu0 %v3607_v37  ;;  %v3667_v37 = vld [vmem:[#allocation8 + $0x7cc] ss:$16 sps:$4 sm:$0xff]  }
 0x349   :  { %2782 = vmatpush1.bf16.msra.mxu1 %v3701_v48 }
 0x34a   :  { %2296 = vmatpush1.bf16.msra.mxu0 %v3605_v40  ;;  %2783 = vmatprep.subr.bf16.mxu1 %v3706_v16  ;;  %v3668_v40 = vld [vmem:[#allocation8 + $0x7e8] ss:$16 sps:$4 sm:$0xff]  }
 0x34b   :  { %2297 = vmatprep.subr.bf16.mxu0 %v3610_v47  ;;  %v4109_v47 = vld [vmem:[%s4139_s5] sm:$0xf] }
 0x34c   :  { %v732_v48 = vrot.slane %v4109_v47, %v4039_v42  ;;  %v736_v16 = vrot.slane %v4109_v47, %v4048_v45 }
 0x34d   :  { %2784 = vmatpush1.bf16.msra.mxu1 %v3704_v52 }
 0x34e   :  { %2298 = vmatpush1.bf16.msra.mxu0 %v3608_v50  ;;  %2785 = vmatprep.subr.bf16.mxu1 %v3709_v53 }
 0x34f   :  { %2299 = vmatprep.subr.bf16.mxu0 %v3613_v51 }
 0x351   :  { %2786 = vmatpush1.bf16.msra.mxu1 %v3707_v56 }
 0x352   :  { %2300 = vmatpush1.bf16.msra.mxu0 %v3611_v54  ;;  %2787 = vmatprep.subr.bf16.mxu1 %v3712_v57 }
 0x353   :  { %2301 = vmatprep.subr.bf16.mxu0 %v3616_v55 }
 0x355   :  { %2788 = vmatpush1.bf16.msra.mxu1 %v3710_v58  ;;  %v3719_v58 = vld [vmem:[#allocation10 + $0x100] ss:$8 sps:$4 sm:$0xff]  }
 0x356   :  { %2302 = vmatpush1.bf16.msra.mxu0 %v3614_v9  ;;  %2789 = vmatprep.subr.bf16.mxu1 %v3715_v8  ;;  %v3748_v8 = vld [vmem:[#allocation10 + $0x194] ss:$8 sps:$4 sm:$0xff]  }
 0x357   :  { %2303 = vmatprep.subr.bf16.mxu0 %v3619_v44 }
 0x359   :  { %2790 = vmatpush1.bf16.msra.mxu1 %v3713_v14  ;;  %v3751_v14 = vld [vmem:[#allocation10 + $0x1a4] ss:$8 sps:$4 sm:$0xff]  }
 0x35a   :  { %2304 = vmatpush1.bf16.msra.mxu0 %v3617_v60  ;;  %2791 = vmatprep.subr.bf16.mxu1 %v3718_v20  ;;  %v3755_v20 = vld [vmem:[#allocation10 + $0x1c0] ss:$8 sps:$4 sm:$0xff]  }
 0x35b   :  { %2305 = vmatprep.subr.bf16.mxu0 %v3622_v13  ;;  %v3724_v13 = vld [vmem:[#allocation10 + $0x114] ss:$8 sps:$4 sm:$0xff]  }
 0x35d   :  { %2792 = vmatpush1.bf16.msra.mxu1 %v3716_v21  ;;  %v3760_v21 = vld [vmem:[#allocation10 + $0x1d4] ss:$8 sps:$4 sm:$0xff]  }
 0x35e   :  { %2306 = vmatpush1.bf16.msra.mxu0 %v3620_v5  ;;  %2802 = vmatprep.subr.bf16.mxu1 %v3721_v24  ;;  %v3722_v5 = vld [vmem:[#allocation10 + $0x110] ss:$8 sps:$4 sm:$0xff]   ;;  %v3761_v24 = vld [vmem:[#allocation10 + $0x1e0] ss:$8 sps:$4 sm:$0xff]  }
 0x35f   :  { %2316 = vmatprep.subr.bf16.mxu0 %v3625_v61  ;;  %v3727_v61 = vld [vmem:[#allocation10 + $0x124] ss:$8 sps:$4 sm:$0xff]  }
 0x361   :  { %2308 = vmatmul.mubr.bf16.vlgmr.msra.gmra.mrb[16].mxu0 %v4087_v12  ;;  %v3638_v12 = vld [vmem:[#allocation8 + $0x6a8] ss:$16 sps:$4 sm:$0xff]  }
 0x362   :  { %2317 = vmatpush1.bf16.msra.mxu0 %v3623_v62  ;;  %2348 = vmatprep.mubr.bf16.mxu0 %v4089_v49  ;;  %v3643_v49 = vld [vmem:[#allocation8 + $0x6cc] ss:$16 sps:$4 sm:$0xff]   ;;  %v3725_v62 = vld [vmem:[#allocation10 + $0x120] ss:$8 sps:$4 sm:$0xff]  }
 0x363   :  { %2318 = vmatprep.subr.bf16.mxu0 %v3628_v63  ;;  %v3730_v63 = vld [vmem:[#allocation10 + $0x134] ss:$8 sps:$4 sm:$0xff]  }
 0x366   :  { %2319 = vmatpush1.bf16.msra.mxu0 %v3626_v0  ;;  %v3728_v0 = vld [vmem:[#allocation10 + $0x130] ss:$8 sps:$4 sm:$0xff]  }
 0x367   :  { %2320 = vmatprep.subr.bf16.mxu0 %v3631_v1  ;;  %v3733_v1 = vld [vmem:[#allocation10 + $0x144] ss:$8 sps:$4 sm:$0xff]  }
 0x36a   :  { %2321 = vmatpush1.bf16.msra.mxu0 %v3629_v2  ;;  %v3731_v2 = vld [vmem:[#allocation10 + $0x140] ss:$8 sps:$4 sm:$0xff]  }
 0x36b   :  { %2322 = vmatprep.subr.bf16.mxu0 %v3634_v3  ;;  %v3736_v3 = vld [vmem:[#allocation10 + $0x154] ss:$8 sps:$4 sm:$0xff]  }
 0x36e   :  { %2323 = vmatpush1.bf16.msra.mxu0 %v3632_v4  ;;  %v3734_v4 = vld [vmem:[#allocation10 + $0x150] ss:$8 sps:$4 sm:$0xff]  }
 0x36f   :  { %2324 = vmatprep.subr.bf16.mxu0 %v3637_v10  ;;  %v3739_v10 = vld [vmem:[#allocation10 + $0x164] ss:$8 sps:$4 sm:$0xff]  }
 0x372   :  { %2325 = vmatpush1.bf16.msra.mxu0 %v3635_v6  ;;  %v3737_v6 = vld [vmem:[#allocation10 + $0x160] ss:$8 sps:$4 sm:$0xff]  }
 0x373   :  { %v2063_v27 = vpop.f32.mrb[12].mxu0  ;;  %2326 = vmatprep.subr.bf16.mxu0 %v3640_v7  ;;  %v3742_v7 = vld [vmem:[#allocation10 + $0x174] ss:$8 sps:$4 sm:$0xff]  }
 0x374   :  { %v2065_v11 = vpop.f32.mrb[13].mxu0  ;;  %v2064_v50 = vadd.f32 %v2063_v27, %v732_v48  ;;  %v3745_v27 = vld [vmem:[#allocation10 + $0x184] ss:$8 sps:$4 sm:$0xff]  }
 0x375   :  { %v2067_v15 = vpop.f32.mrb[14].mxu0  ;;  %v2066_v51 = vadd.f32 %v2065_v11, %v736_v16  ;;  %v3746_v11 = vld [vmem:[#allocation10 + $0x190] ss:$8 sps:$4 sm:$0xff]  }
 0x376   :  { %2327 = vmatpush1.bf16.msra.mxu0 %v3638_v12  ;;  %v2068_v17 = vpop.f32.mrb[15].mxu0  ;;  %v3740_v12 = vld [vmem:[#allocation10 + $0x170] ss:$8 sps:$4 sm:$0xff]   ;;  %v3749_v15 = vld [vmem:[#allocation10 + $0x1a0] ss:$8 sps:$4 sm:$0xff]  }
 0x377   :  { %2328 = vmatprep.subr.bf16.mxu0 %v3643_v49  ;;  %v3743_v49 = vld [vmem:[#allocation10 + $0x180] ss:$8 sps:$4 sm:$0xff]   ;;  %v3754_v17 = vld [vmem:[#allocation10 + $0x1b4] ss:$8 sps:$4 sm:$0xff]  }
 0x37a   :  { %2329 = vmatpush1.bf16.msra.mxu0 %v3641_v18  ;;  %v3752_v18 = vld [vmem:[#allocation10 + $0x1b0] ss:$8 sps:$4 sm:$0xff]  }
 0x37b   :  { %2330 = vmatprep.subr.bf16.mxu0 %v3646_v19  ;;  %v3757_v19 = vld [vmem:[#allocation10 + $0x1c4] ss:$8 sps:$4 sm:$0xff]  }
 0x37e   :  { %2331 = vmatpush1.bf16.msra.mxu0 %v3644_v22  ;;  %v3758_v22 = vld [vmem:[#allocation10 + $0x1d0] ss:$8 sps:$4 sm:$0xff]  }
 0x37f   :  { %2332 = vmatprep.subr.bf16.mxu0 %v3649_v23  ;;  %v3763_v23 = vld [vmem:[#allocation10 + $0x1e4] ss:$8 sps:$4 sm:$0xff]  }
 0x382   :  { %2333 = vmatpush1.bf16.msra.mxu0 %v3647_v25  ;;  %v3766_v25 = vld [vmem:[#allocation10 + $0x1f4] ss:$8 sps:$4 sm:$0xff]  }
 0x383   :  { %2334 = vmatprep.subr.bf16.mxu0 %v3652_v26  ;;  %v3764_v26 = vld [vmem:[#allocation10 + $0x1f0] ss:$8 sps:$4 sm:$0xff]  }
 0x386   :  { %2335 = vmatpush1.bf16.msra.mxu0 %v3650_v28  ;;  %v740_v28 = vrot.slane %v4109_v47, %v217_v43  ;;  %v2429_v43 = vld [vmem:[%s4141_s7] sm:$0x3] }
 0x387   :  { %2336 = vmatprep.subr.bf16.mxu0 %v3655_v29  ;;  %v744_v29 = vrot.slane %v4109_v47, %v221_v46  ;;  %v2434_v41 = vrot.slane %v2429_v43, %v4039_v42  ;;  %v2438_v46 = vrot.slane %v2429_v43, %v4048_v45 }
 0x38a   :  { %2337 = vmatpush1.bf16.msra.mxu0 %v3653_v30 }
 0x38b   :  { %2338 = vmatprep.subr.bf16.mxu0 %v3658_v31 }
 0x38e   :  { %2339 = vmatpush1.bf16.msra.mxu0 %v3656_v32 }
 0x38f   :  { %2340 = vmatprep.subr.bf16.mxu0 %v3661_v33 }
 0x392   :  { %2341 = vmatpush1.bf16.msra.mxu0 %v3659_v34 }
 0x393   :  { %2342 = vmatprep.subr.bf16.mxu0 %v3664_v35 }
 0x396   :  { %2343 = vmatpush1.bf16.msra.mxu0 %v3662_v36 }
 0x397   :  { %2344 = vmatprep.subr.bf16.mxu0 %v3667_v37 }
 0x39a   :  { %2345 = vmatpush1.bf16.msra.mxu0 %v3665_v38 }
 0x39b   :  { %2346 = vmatprep.subr.bf16.mxu0 %v3670_v39 }
 0x39e   :  { %2347 = vmatpush1.bf16.msra.mxu0 %v3668_v40 }
 0x3a1   :  { %2349 = vmatmul.mubr.bf16.vlgmr.msra.gmra.mrb[16].mxu0 %v4098_v59 }
 0x3f3   :  { %v2186_v52 = vpop.f32.mrb[8].mxu1 }
 0x3f4   :  { %v3240_v53 = vadd.f32 %v2186_v52, %v2064_v50  ;;  %v2188_v54 = vpop.f32.mrb[9].mxu1 }
 0x3f5   :  { %v3242_v55 = vadd.f32 %v2188_v54, %v2066_v51  ;;  %v2190_v56 = vpop.f32.mrb[10].mxu1  ;;  %v2849_v51 = vld [vmem:[%s4142_s8] sm:$0x3] }
 0x3f6   :  { %v2357_v57 = vmax.f32 %v3240_v53, 0.0  ;;  %v2191_v59 = vpop.f32.mrb[11].mxu1  ;;  %v2854_v56 = vrot.slane %v2849_v51, %v4039_v42 }
 0x3f7   :  { %v2358_v9 = vmax.f32 %v3242_v55, 0.0  ;;  %v2858_v59 = vrot.slane %v2849_v51, %v4048_v45 }
 0x3f8   :  { %v2361_v60 = vpack.c.bf16 %v2357_v57, %v2357_v57 }
 0x3f9   :  { %v2362_v44 = vpack.c.bf16 %v2358_v9, %v2358_v9 }
 0x3fb   :  { %2793 = vmatprep.mubr.bf16.mxu1 %v2362_v44 }
 0x3fc   :  { %2794 = vmatmul.mubr.bf16.vlgmr.msra.gmra.mrb[12].mxu1 %v2361_v60 }
 0x3fd   :  { %2803 = vmatpush1.bf16.msra.mxu1 %v3719_v58 }
 0x3fe   :  { %2804 = vmatprep.subr.bf16.mxu1 %v3724_v13 }
 0x401   :  { %2805 = vmatpush1.bf16.msra.mxu1 %v3722_v5  ;;  %v3216_v5 = vld [vmem:[#allocation2] ss:$0 sm:$0xff] }
 0x402   :  { %2806 = vmatprep.subr.bf16.mxu1 %v3727_v61 }
 0x405   :  { %2807 = vmatpush1.bf16.msra.mxu1 %v3725_v62 }
 0x406   :  { %2808 = vmatprep.subr.bf16.mxu1 %v3730_v63 }
 0x409   :  { %2809 = vmatpush1.bf16.msra.mxu1 %v3728_v0 }
 0x40a   :  { %2810 = vmatprep.subr.bf16.mxu1 %v3733_v1 }
 0x40d   :  { %2811 = vmatpush1.bf16.msra.mxu1 %v3731_v2 }
 0x40e   :  { %2812 = vmatprep.subr.bf16.mxu1 %v3736_v3 }
 0x411   :  { %2813 = vmatpush1.bf16.msra.mxu1 %v3734_v4 }
 0x412   :  { %2814 = vmatprep.subr.bf16.mxu1 %v3739_v10 }
 0x415   :  { %2815 = vmatpush1.bf16.msra.mxu1 %v3737_v6 }
 0x416   :  { %2816 = vmatprep.subr.bf16.mxu1 %v3742_v7 }
 0x419   :  { %2817 = vmatpush1.bf16.msra.mxu1 %v3740_v12 }
 0x41a   :  { %2818 = vmatprep.subr.bf16.mxu1 %v3745_v27 }
 0x41d   :  { %2819 = vmatpush1.bf16.msra.mxu1 %v3743_v49 }
 0x41e   :  { %2820 = vmatprep.subr.bf16.mxu1 %v3748_v8 }
 0x421   :  { %2821 = vmatpush1.bf16.msra.mxu1 %v3746_v11 }
 0x422   :  { %2822 = vmatprep.subr.bf16.mxu1 %v3751_v14 }
 0x425   :  { %2823 = vmatpush1.bf16.msra.mxu1 %v3749_v15 }
 0x426   :  { %2824 = vmatprep.subr.bf16.mxu1 %v3754_v17 }
 0x429   :  { %2825 = vmatpush1.bf16.msra.mxu1 %v3752_v18 }
 0x42a   :  { %2826 = vmatprep.subr.bf16.mxu1 %v3757_v19 }
 0x42d   :  { %2827 = vmatpush1.bf16.msra.mxu1 %v3755_v20 }
 0x42e   :  { %2828 = vmatprep.subr.bf16.mxu1 %v3760_v21 }
 0x431   :  { %2829 = vmatpush1.bf16.msra.mxu1 %v3758_v22 }
 0x432   :  { %2830 = vmatprep.subr.bf16.mxu1 %v3763_v23 }
 0x435   :  { %2831 = vmatpush1.bf16.msra.mxu1 %v3761_v24 }
 0x436   :  { %2832 = vmatprep.subr.bf16.mxu1 %v3766_v25 }
 0x439   :  { %2833 = vmatpush1.bf16.msra.mxu1 %v3764_v26 }
 0x474   :  { %v2350_v30 = vpop.f32.mrb[16].mxu0 }
 0x475   :  { %v3243_v31 = vadd.f32 %v2350_v30, %v740_v28  ;;  %v2352_v32 = vpop.f32.mrb[17].mxu0 }
 0x476   :  { %v3244_v33 = vadd.f32 %v2352_v32, %v744_v29  ;;  %v2354_v34 = vpop.f32.mrb[18].mxu0 }
 0x477   :  { %v2359_v35 = vmax.f32 %v3243_v31, 0.0  ;;  %v2355_v36 = vpop.f32.mrb[19].mxu0 }
 0x478   :  { %v2360_v37 = vmax.f32 %v3244_v33, 0.0 }
 0x479   :  { %v2363_v39 = vpack.c.bf16 %v2359_v35, %v2359_v35 }
 0x47a   :  { %v2364_v38 = vpack.c.bf16 %v2360_v37, %v2360_v37 }
 0x47c   :  { %2834 = vmatprep.mubr.bf16.mxu1 %v2364_v38 }
 0x47d   :  { %2835 = vmatmul.mubr.bf16.vlgmr.msra.gmra.mrb[12].mxu1 %v2363_v39 }
 0x550   :  { %v2836_v40 = vpop.f32.mrb[12].mxu1 }
 0x551   :  { %v3245_v47 = vadd.f32 %v2836_v40, %v2434_v41  ;;  %v2838_v48 = vpop.f32.mrb[13].mxu1 }
 0x552   :  { %v3246_v16 = vadd.f32 %v2838_v48, %v2438_v46  ;;  %v2840_v50 = vpop.f32.mrb[14].mxu1 }
 0x553   :  { %v2843_v52 = vmax.f32 %v3245_v47, 0.0  ;;  %v2841_v53 = vpop.f32.mrb[15].mxu1 }
 0x554   :  { %v2844_v54 = vmax.f32 %v3246_v16, 0.0 }
 0x555   :  { %v2845_v55 = vpack.c.bf16 %v2843_v52, %v2843_v52 }
 0x556   :  { %v2846_v57 = vpack.c.bf16 %v2844_v54, %v2844_v54 }
 0x557   :  { %v2847_v9 = vunpack.c.l.bf16 %v2845_v55 }
 0x558   :  { %v2848_v44 = vunpack.c.l.bf16 %v2846_v57 }
 0x559   :  { %v2861_v58 = vmul.f32 %v2854_v56, %v2847_v9 }
 0x55a   :  { %v2862_v60 = vmul.f32 %v2858_v59, %v2848_v44 }
 0x55c   :  { %v2863_v13 = vadd.f32 %v2862_v60, %v2861_v58 }
 0x55e   :  { %2864 = vadd.xlane.f32.xlu0 %v2863_v13 }
 0x5eb   :  { %v2865_v61 = vpop.xlane.xlu0 %2864 }
 0x5ec   :  { %v2873_v62 = vadd.f32 %v3216_v5, %v2865_v61 }
 0x5ee   :  { %2875 = vst.msk [vmem:[%s4144_s10] sm:$0xff] %vm2874_vm5, %v2873_v62 }
 0x5ef   :  { %2880 = vsyncpa [#allocation4], 1 }
 0x5f0   :  { %2881 = vsyncpa [#allocation6], 1 }
 0x5f1   :  { %2882 = vsyncpa [#allocation9], 1 }

</bundles_post_ra>
